<compile_context>
chip_gen: v5e
topology: v5e:2x2
jax: 0.10.0
libtpu: 0.0.40
codegen_flags: <defaults>
</compile_context>

<pallas_src>
import functools

import jax
import jax.numpy as jnp
from jax import lax
from jax.experimental import pallas as pl
from jax.experimental.pallas import tpu as pltpu


def _round_up(v, m):
    return ((v + m - 1) // m) * m


# --------------------------------------------------------------------------------- conv #1
def _conv_fm_kernel(xwin_ref, atoms_ref, fm_ref, *, atom_len, kal, tile_t):
    """fm[c, t0 + tau] = sum_k atoms[c, k] * x[t0 + tau - k]  for one (batch, T-tile).

    The (K, tile_t) Toeplitz / lag slab is built by sublane-broadcasting the input window and
    applying a single strided lane-roll (row k rotated right by k) on the XLU, then taking the
    lane-aligned column slice [kal, kal + tile_t).  Window layout (built in the wrapper):
        xw[i] = x[t0 - kal + i],  kal = round_up(K - 1, 128)
    so  roll_k(xw)[kal + tau] = xw[kal + tau - k] = x[t0 + tau - k]  (never wraps: k <= K-1 <= kal).
    """
    wp = kal + tile_t
    xw = xwin_ref[0, 0]                                             # (1, wp) f32 window
    slab = pltpu.roll(jnp.broadcast_to(xw, (atom_len, wp)),
                      shift=0, axis=1, stride=1, stride_axis=0)     # row k: roll-right by k
    lag = slab[:, kal:kal + tile_t].astype(jnp.bfloat16)            # (K, tile_t) lag slab
    fm_ref[0] = jnp.dot(atoms_ref[...], lag,                        # (C, K) @ (K, tile_t) on MXU
                        preferred_element_type=jnp.float32)


# --------------------------------------------------------------------------------- conv #2
def _recon_partial_kernel(fm_ref, atoms_t_ref, out_ref, g_ref, *, atom_len, tile_t, wg):
    """Overlap-add partial of recon for one (batch, T-tile) of fm_sparse.

      G[k, tau]  = sum_c atoms[c, k] * fm_sparse[c, t0 + tau]        (MXU)
      partial[j] = sum_k G[k, j - k],  0 <= j - k < tile_t           (strided roll + sublane sum)

    partial[j] is this tile's contribution to recon[t0 + j], j in [0, tile_t + K - 1); the
    wrapper overlap-adds the partials.  Row k of the zero-tailed G is rotated right by k, so
    wrapped / overrun elements land in the zero tail and a plain sublane reduction yields the
    partial — no serial anti-diagonal add chain, no overlapping fm windows in HBM.
    """
    t = pl.program_id(1)

    @pl.when(t == 0)
    def _():
        # Zero the pad tail once per batch sweep (t axis is "arbitrary", so t == 0 runs first
        # on every core); columns [:tile_t] are overwritten by the matmul every step.
        g_ref[:, tile_t:] = jnp.zeros((atom_len, wg - tile_t), jnp.float32)

    g_ref[:, :tile_t] = jnp.dot(atoms_t_ref[...], fm_ref[0],        # (K, C) @ (C, tile_t) on MXU
                                preferred_element_type=jnp.float32)
    rolled = pltpu.roll(g_ref[...], shift=0, axis=1, stride=1, stride_axis=0)
    out_ref[0, 0] = jnp.sum(rolled, axis=0, keepdims=True)          # (1, wg), lane-dense store


def sparse_coding_forward(x, atoms, n_to_keep, *, tile_t=256):
    """x: (B, 1, T) float32, atoms: (C, K) float32 -> recon: (B, 1, T) float32.

    tile_t: 256 fills the 256-wide MXU N dim on v6e/v7x; raise to 512-1024 on v6e (128 MiB
    VMEM, raise vmem_limit accordingly); keep 128-256 on v5e (4x128x128 MXU, bandwidth-bound).
    """
    B, _, T = x.shape
    C, K = atoms.shape
    assert T % tile_t == 0, "tile_t must divide n_samples"
    assert tile_t % 128 == 0, "tile_t must be lane aligned"
    assert C % 8 == 0 and K % 8 == 0
    nT = T // tile_t
    kal = _round_up(K - 1, 128)            # lane-aligned history length of the conv#1 window
    wp = kal + tile_t                      # conv#1 window width (lane aligned)
    wg = _round_up(tile_t + K - 1, 128)    # conv#2 partial width (minimal, lane aligned)

    # bf16 MXU operands, f32 accumulation (2x MXU rate on v6e/v7x, half the operand DMA).
    atoms_bf = atoms.astype(jnp.bfloat16)

    # ---- conv #1: fm = causal_conv(x, atoms).  Only x (B, T) is windowed — it is tiny, so the
    # ~wp/tile_t duplication costs nothing; the large fm_sparse is NOT windowed (see conv #2).
    xpad = jnp.pad(x[:, 0, :], ((0, 0), (kal, 0)))                           # (B, kal + T)
    win_idx = (jnp.arange(nT) * tile_t)[:, None] + jnp.arange(wp)[None, :]   # (nT, wp)
    xwin = xpad[:, win_idx][:, :, None, :]                                   # (B, nT, 1, wp) f32

    fm = pl.pallas_call(
        functools.partial(_conv_fm_kernel, atom_len=K, kal=kal, tile_t=tile_t),
        out_shape=jax.ShapeDtypeStruct((B, C, T), jnp.float32),
        grid_spec=pltpu.PrefetchScalarGridSpec(
            num_scalar_prefetch=0,
            grid=(B, nT),
            in_specs=[
                pl.BlockSpec((1, 1, 1, wp), lambda b, t: (b, t, 0, 0)),
                # TODO(synk): pipeline_mode=pl.Buffered(1) on this constant-block spec would
                # single-buffer atoms (~4 MiB saved at production); left at the default pending
                # verification that single-buffer pipeline_mode lowers on all targets.
                pl.BlockSpec((C, K), lambda b, t: (0, 0)),
            ],
            out_specs=pl.BlockSpec((1, C, tile_t), lambda b, t: (b, 0, t)),
        ),
        compiler_params=pltpu.CompilerParams(
            dimension_semantics=("parallel", "parallel"),
            vmem_limit_bytes=48 * 1024 * 1024,
        ),
    )(xwin, atoms_bf)

    # ---- sparsify: exact top-k over the flattened (C, T) per batch element (signed values,
    # matching the reference module's sparsify).  Plain JAX between the two pallas_calls: fm
    # round-trips HBM at production scale anyway and lax.top_k resolves ties exactly.
    flat = fm.reshape(B, C * T)
    vals, inds = lax.top_k(flat, n_to_keep)
    fm_sparse = jnp.zeros_like(flat).at[jnp.arange(B)[:, None], inds].set(vals)
    fm_sparse = fm_sparse.reshape(B, C, T).astype(jnp.bfloat16)

    # ---- conv #2: per-tile overlap-add partials; fm_sparse is read in non-overlapping blocks.
    partials = pl.pallas_call(
        functools.partial(_recon_partial_kernel, atom_len=K, tile_t=tile_t, wg=wg),
        out_shape=jax.ShapeDtypeStruct((B, nT, 1, wg), jnp.float32),
        grid_spec=pltpu.PrefetchScalarGridSpec(
            num_scalar_prefetch=0,
            grid=(B, nT),
            in_specs=[
                pl.BlockSpec((1, C, tile_t), lambda b, t: (b, 0, t)),
                pl.BlockSpec((K, C), lambda b, t: (0, 0)),
            ],
            out_specs=pl.BlockSpec((1, 1, 1, wg), lambda b, t: (b, t, 0, 0)),
            scratch_shapes=[pltpu.VMEM((K, wg), jnp.float32)],
        ),
        compiler_params=pltpu.CompilerParams(
            # t is "arbitrary" (sequential per core) so the t == 0 scratch-tail init always
            # precedes the other t steps of the same batch; b stays "parallel" for megacore.
            dimension_semantics=("parallel", "arbitrary"),
            vmem_limit_bytes=48 * 1024 * 1024,
        ),
    )(fm_sparse, jnp.transpose(atoms_bf))

    # ---- overlap-add of the partials (tiny: ~(wg/tile_t) * T floats per batch element).
    seg_idx = (jnp.arange(nT) * tile_t)[:, None] + jnp.arange(wg)[None, :]   # (nT, wg)
    recon = jnp.zeros((B, T + wg), jnp.float32).at[:, seg_idx].add(partials[:, :, 0, :])
    return recon[:, :T][:, None, :]


def _reference_forward(x, atoms, n_to_keep):
    """Pure-JAX reference with identical semantics (for verification)."""
    B, _, T = x.shape
    C, K = atoms.shape
    idx = jnp.arange(T)[None, :] + (K - 1 - jnp.arange(K))[:, None]      # (K, T)

    xp = jnp.pad(x[:, 0, :], ((0, 0), (K - 1, 0)))                        # (B, T+K-1)
    Xs = xp[:, idx]                                                       # (B, K, T)
    fm = jnp.einsum('ck,bkt->bct', atoms, Xs)                             # (B, C, T)

    flat = fm.reshape(B, -1)
    vals, inds = lax.top_k(flat, n_to_keep)
    sparse = jnp.zeros_like(flat).at[jnp.arange(B)[:, None], inds].set(vals)
    fm_s = sparse.reshape(B, C, T)

    fmp = jnp.pad(fm_s, ((0, 0), (0, 0), (K - 1, 0)))                     # (B, C, T+K-1)
    Ys = fmp[:, :, idx]                                                   # (B, C, K, T)
    rec = jnp.einsum('ck,bckt->bt', atoms, Ys)                            # (B, T)
    return rec[:, None, :]


if __name__ == "__main__":
    # Scaled-down shapes consistent with the module
    # (original: T=32768 samples, C=1024 atoms, K=2048 atom length, n_to_keep=1024).
    B, C, K, T, N_KEEP = 2, 16, 64, 256, 32
    TILE_T = 128

    key = jax.random.PRNGKey(0)
    k_atoms, k_x = jax.random.split(key)
    # nn.Parameter(torch.zeros(1, 1024, 2048).uniform_(-0.01, 0.01)) -> uniform(-0.01, 0.01).
    # Test data is rounded to the bf16 grid so the bf16-staged MXU products are exact.
    atoms = jax.random.uniform(k_atoms, (C, K), jnp.float32, -0.01, 0.01)
    atoms = atoms.astype(jnp.bfloat16).astype(jnp.float32)
    x = jax.random.normal(k_x, (B, 1, T), jnp.float32)
    x = x.astype(jnp.bfloat16).astype(jnp.float32)

    fwd = jax.jit(lambda xx, aa: sparse_coding_forward(xx, aa, N_KEEP, tile_t=TILE_T))
    out = jax.block_until_ready(fwd(x, atoms))

    ref = _reference_forward(x, atoms, N_KEEP)
    assert out.shape == (B, 1, T), out.shape
    err = float(jnp.max(jnp.abs(out - ref)))
    # bf16 staging of the sparsified feature map (f32 accumulate) -> loosened tolerance vs the
    # pure-f32 reference; estimated worst-case abs error ~1e-4 at these shapes.
    assert jnp.allclose(out, ref, rtol=5e-3, atol=5e-4), f"max abs err {err}"

    print("KERNEL_OK")
</pallas_src>

<mosaic_0001>
module attributes {stable_mosaic.version = 11 : i64} {
  func.func @_conv_fm_kernel(%arg0: i32, %arg1: i32, %arg2: memref<1x1x1x256xf32, #tpu.memory_space<vmem>>, %arg3: memref<16x64xbf16, #tpu.memory_space<vmem>>, %arg4: memref<1x16x128xf32, #tpu.memory_space<vmem>>) attributes {dimension_semantics = [#tpu.dimension_semantics<parallel>, #tpu.dimension_semantics<parallel>], iteration_bounds = array<i64: 2, 2>, scalar_prefetch = 0 : i64, scratch_operands = 0 : i64, tpu.core_type = #tpu.core_type<tc>, window_params = [{transform_indices = @transform_0, window_bounds = array<i64: 1, 1, 1, 256>}, {pipeline_mode = #tpu.pipeline_mode<synchronous>, transform_indices = @transform_1, window_bounds = array<i64: 16, 64>}, {transform_indices = @transform_2, window_bounds = array<i64: 1, 16, 128>}]} {
    %c0 = arith.constant 0 : index
    %c0_0 = arith.constant 0 : index
    %c0_1 = arith.constant 0 : index
    %c0_2 = arith.constant 0 : index
    %0 = vector.load %arg2[%c0, %c0_0, %c0_1, %c0_2] : memref<1x1x1x256xf32, #tpu.memory_space<vmem>>, vector<1x1x1x256xf32>
    %1 = vector.shape_cast %0 : vector<1x1x1x256xf32> to vector<1x256xf32>
    %2 = vector.shape_cast %1 : vector<1x256xf32> to vector<1x256xf32>
    %3 = vector.broadcast %2 : vector<1x256xf32> to vector<64x256xf32>
    %c0_i32 = arith.constant 0 : i32
    %4 = tpu.dynamic_rotate %3 by %c0_i32 dim 1 {stride = 1 : si32, stride_dimension = 0 : si32} : vector<64x256xf32>, i32 -> vector<64x256xf32>
    %5 = vector.extract_strided_slice %4 {offsets = [0, 128], sizes = [64, 128], strides = [1, 1]} : vector<64x256xf32> to vector<64x128xf32>
    %6 = arith.truncf %5 : vector<64x128xf32> to vector<64x128xbf16>
    %c0_3 = arith.constant 0 : index
    %c0_4 = arith.constant 0 : index
    %7 = vector.load %arg3[%c0_3, %c0_4] : memref<16x64xbf16, #tpu.memory_space<vmem>>, vector<16x64xbf16>
    %cst = arith.constant dense<0.000000e+00> : vector<16x128xf32>
    %8 = tpu.matmul %7, %6, %cst {dimension_numbers = #tpu.dot_dimension_numbers<[1], [0], [0], [1], [0, 0, 1, 1], [], []>} : vector<16x64xbf16>, vector<64x128xbf16>, vector<16x128xf32> -> vector<16x128xf32>
    %c0_5 = arith.constant 0 : index
    %c0_6 = arith.constant 0 : index
    %c0_7 = arith.constant 0 : index
    %9 = vector.load %arg4[%c0_5, %c0_6, %c0_7] : memref<1x16x128xf32, #tpu.memory_space<vmem>>, vector<1x16x128xf32>
    %10 = vector.shape_cast %9 : vector<1x16x128xf32> to vector<16x128xf32>
    %11 = vector.shape_cast %8 : vector<16x128xf32> to vector<1x16x128xf32>
    tpu.vector_store %arg4[%c0_5, %c0_6, %c0_7], %11 {strides = array<i32>} : memref<1x16x128xf32, #tpu.memory_space<vmem>>, vector<1x16x128xf32>,
    return
  }
  func.func @transform_0(%arg0: i32, %arg1: i32) -> (i32, i32, i32, i32) {
    %c0_i32 = arith.constant 0 : i32
    %c0_i32_0 = arith.constant 0 : i32
    %c0_i32_1 = arith.constant 0 : i32
    return %arg0, %arg1, %c0_i32, %c0_i32_0 : i32, i32, i32, i32
  }
  func.func @transform_1(%arg0: i32, %arg1: i32) -> (i32, i32) {
    %c0_i32 = arith.constant 0 : i32
    %c0_i32_0 = arith.constant 0 : i32
    %c0_i32_1 = arith.constant 0 : i32
    return %c0_i32, %c0_i32_0 : i32, i32
  }
  func.func @transform_2(%arg0: i32, %arg1: i32) -> (i32, i32, i32) {
    %c0_i32 = arith.constant 0 : i32
    %c0_i32_0 = arith.constant 0 : i32
    return %arg0, %c0_i32, %arg1 : i32, i32, i32
  }
}

module attributes {stable_mosaic.version = 11 : i64} {
  func.func @_recon_partial_kernel(%arg0: i32, %arg1: i32, %arg2: memref<1x16x128xbf16, #tpu.memory_space<vmem>>, %arg3: memref<64x16xbf16, #tpu.memory_space<vmem>>, %arg4: memref<1x1x1x256xf32, #tpu.memory_space<vmem>>, %arg5: memref<64x256xf32, #tpu.memory_space<vmem>>) attributes {dimension_semantics = [#tpu.dimension_semantics<parallel>, #tpu.dimension_semantics<arbitrary>], iteration_bounds = array<i64: 2, 2>, scalar_prefetch = 0 : i64, scratch_operands = 1 : i64, tpu.core_type = #tpu.core_type<tc>, window_params = [{transform_indices = @transform_0, window_bounds = array<i64: 1, 16, 128>}, {pipeline_mode = #tpu.pipeline_mode<synchronous>, transform_indices = @transform_1, window_bounds = array<i64: 64, 16>}, {transform_indices = @transform_2, window_bounds = array<i64: 1, 1, 1, 256>}]} {
    %c0_i32 = arith.constant 0 : i32
    %0 = arith.cmpi eq, %arg1, %c0_i32 : i32
    %1 = arith.extui %0 : i1 to i32
    %c0_i32_0 = arith.constant 0 : i32
    %2 = arith.cmpi ne, %1, %c0_i32_0 : i32
    scf.if %2 {
      %cst_15 = arith.constant 0.000000e+00 : f32
      %15 = vector.broadcast %cst_15 : f32 to vector<64x128xf32>
      %c0_16 = arith.constant 0 : index
      %c128 = arith.constant 128 : index
      %16 = vector.load %arg5[%c0_16, %c128] : memref<64x256xf32, #tpu.memory_space<vmem>>, vector<64x128xf32>
      tpu.vector_store %arg5[%c0_16, %c128], %15 {strides = array<i32>} : memref<64x256xf32, #tpu.memory_space<vmem>>, vector<64x128xf32>,
    } else {
    }
    %c0 = arith.constant 0 : index
    %c0_1 = arith.constant 0 : index
    %3 = vector.load %arg3[%c0, %c0_1] : memref<64x16xbf16, #tpu.memory_space<vmem>>, vector<64x16xbf16>
    %c0_2 = arith.constant 0 : index
    %c0_3 = arith.constant 0 : index
    %c0_4 = arith.constant 0 : index
    %4 = vector.load %arg2[%c0_2, %c0_3, %c0_4] : memref<1x16x128xbf16, #tpu.memory_space<vmem>>, vector<1x16x128xbf16>
    %5 = vector.shape_cast %4 : vector<1x16x128xbf16> to vector<16x128xbf16>
    %cst = arith.constant dense<0.000000e+00> : vector<64x128xf32>
    %6 = tpu.matmul %3, %5, %cst {dimension_numbers = #tpu.dot_dimension_numbers<[1], [0], [0], [1], [0, 0, 1, 1], [], []>} : vector<64x16xbf16>, vector<16x128xbf16>, vector<64x128xf32> -> vector<64x128xf32>
    %c0_5 = arith.constant 0 : index
    %c0_6 = arith.constant 0 : index
    %7 = vector.load %arg5[%c0_5, %c0_6] : memref<64x256xf32, #tpu.memory_space<vmem>>, vector<64x128xf32>
    tpu.vector_store %arg5[%c0_5, %c0_6], %6 {strides = array<i32>} : memref<64x256xf32, #tpu.memory_space<vmem>>, vector<64x128xf32>,
    %c0_7 = arith.constant 0 : index
    %c0_8 = arith.constant 0 : index
    %8 = vector.load %arg5[%c0_7, %c0_8] : memref<64x256xf32, #tpu.memory_space<vmem>>, vector<64x256xf32>
    %c0_i32_9 = arith.constant 0 : i32
    %9 = tpu.dynamic_rotate %8 by %c0_i32_9 dim 1 {stride = 1 : si32, stride_dimension = 0 : si32} : vector<64x256xf32>, i32 -> vector<64x256xf32>
    %cst_10 = arith.constant dense<0.000000e+00> : vector<256xf32>
    %10 = vector.multi_reduction <add>, %9, %cst_10 [0] : vector<64x256xf32> to vector<256xf32>
    %11 = vector.shape_cast %10 : vector<256xf32> to vector<1x256xf32>
    %c0_11 = arith.constant 0 : index
    %c0_12 = arith.constant 0 : index
    %c0_13 = arith.constant 0 : index
    %c0_14 = arith.constant 0 : index
    %12 = vector.load %arg4[%c0_11, %c0_12, %c0_13, %c0_14] : memref<1x1x1x256xf32, #tpu.memory_space<vmem>>, vector<1x1x1x256xf32>
    %13 = vector.shape_cast %12 : vector<1x1x1x256xf32> to vector<1x256xf32>
    %14 = vector.shape_cast %11 : vector<1x256xf32> to vector<1x1x1x256xf32>
    tpu.vector_store %arg4[%c0_11, %c0_12, %c0_13, %c0_14], %14 {strides = array<i32>} : memref<1x1x1x256xf32, #tpu.memory_space<vmem>>, vector<1x1x1x256xf32>,
    return
  }
  func.func @transform_0(%arg0: i32, %arg1: i32) -> (i32, i32, i32) {
    %c0_i32 = arith.constant 0 : i32
    %c0_i32_0 = arith.constant 0 : i32
    return %arg0, %c0_i32, %arg1 : i32, i32, i32
  }
  func.func @transform_1(%arg0: i32, %arg1: i32) -> (i32, i32) {
    %c0_i32 = arith.constant 0 : i32
    %c0_i32_0 = arith.constant 0 : i32
    %c0_i32_1 = arith.constant 0 : i32
    return %c0_i32, %c0_i32_0 : i32, i32
  }
  func.func @transform_2(%arg0: i32, %arg1: i32) -> (i32, i32, i32, i32) {
    %c0_i32 = arith.constant 0 : i32
    %c0_i32_0 = arith.constant 0 : i32
    %c0_i32_1 = arith.constant 0 : i32
    return %arg0, %arg1, %c0_i32, %c0_i32_0 : i32, i32, i32, i32
  }
}

</mosaic_0001>

<bundles_post_ra>
// kernel: custom-call
= control target key start
LH: loop header
LB: loop body
LE: loop exit
PB: predicated region body
PF: predicated region fallthrough
CT: control target
= control target key end

     0   :  { %v2410_v0 = vmov 2147483648   ;;  %v2411_v1 = vmov 2147483647   ;;  %s3078_s0 = inlined_call_operand.vmem [shape: f32[2,4096], index: 0, kind: input, shape index: {}]   ;;  %s3079_s1 = inlined_call_operand.vmem [shape: f32[2,32], index: 1, kind: output, shape index: {0}]   ;;  %s3080_s2 = inlined_call_operand.vmem [shape: s32[2,32], index: 2, kind: output, shape index: {1}]  }
   0x1   :  { %6 = vst [vmem:[#allocation11 + $0x10] sm:$0xff] %v2410_v0 }
   0x2   :  { %8 = vst [vmem:[#allocation11] sm:$0xff] %v2410_v0 }
   0x3   :  { %10 = vst [vmem:[#allocation11 + $0x18] sm:$0xff] %v2410_v0 }
   0x4   :  { %12 = vst [vmem:[#allocation11 + $0x8] sm:$0xff] %v2410_v0 }
   0x5   :  { %13 = vst [vmem:[#allocation13] sm:$0xff] %v2411_v1 }
   0x6   :  { %15 = vst [vmem:[#allocation13 + $0x18] sm:$0xff] %v2411_v1 }
   0x7   :  { %17 = vst [vmem:[#allocation13 + $0x8] sm:$0xff] %v2411_v1 }
   0x8   :  { %19 = vst [vmem:[#allocation13 + $0x10] sm:$0xff] %v2411_v1 }
   0x9   :  { %v36_v2 = vld [vmem:[%s3078_s0] sm:$0xff]  ;;  %v38_v3 = vld [vmem:[%s3078_s0 + $0x8] sm:$0xff]  ;;  %v57_v4 = vlaneseq  ;;  %v40_v5 = vld [vmem:[%s3078_s0 + $0x10] sm:$0xff]  ;;  %v2412_v15 = vmov 2147483648   ;;  %v2413_v29 = vmov 2147483647  }
   0xa   :  { %v42_v6 = vld [vmem:[%s3078_s0 + $0x18] sm:$0xff]  ;;  %v44_v7 = vld [vmem:[%s3078_s0 + $0x20] sm:$0xff]  ;;  %v46_v8 = vld [vmem:[%s3078_s0 + $0x28] sm:$0xff]  ;;  %vm67_vm0 = vcmp.lt.s32.totalorder %v36_v2, 0  ;;  %v68_v11 = vsub.s32 2147483647, %v36_v2 }
   0xb   :  { %v48_v9 = vld [vmem:[%s3078_s0 + $0x30] sm:$0xff]  ;;  %v2456_v10 = vshrl.u32 %v57_v4, 7  ;;  %v50_v12 = vld [vmem:[%s3078_s0 + $0x38] sm:$0xff]  ;;  %v58_v13 = vand.u32 127, %v57_v4  ;;  %vm76_vm1 = vcmp.lt.s32.totalorder %v38_v3, 0  ;;  %170 = vst [vmem:[#allocation12] sm:$0xff] %v2412_v15 }
   0xc   :  { %v77_v14 = vsub.s32 2147483647, %v38_v3  ;;  %vm85_vm2 = vcmp.lt.s32.totalorder %v40_v5, 0  ;;  %v86_v17 = vsub.s32 2147483647, %v40_v5  ;;  %vm94_vm3 = vcmp.lt.s32.totalorder %v42_v6, 0 }
   0xd   :  { %v61_v16 = vshrl.u32 %v2456_v10, 1  ;;  %v95_v18 = vsub.s32 2147483647, %v42_v6  ;;  %v104_v19 = vsub.s32 2147483647, %v44_v7  ;;  %172 = vst [vmem:[#allocation12 + $0x8] sm:$0xff] %v2412_v15  ;;  %v69_v22 = vsel %vm67_vm0, %v68_v11, %v36_v2 }
   0xe   :  { %v113_v20 = vsub.s32 2147483647, %v46_v8  ;;  %vm103_vm4 = vcmp.lt.s32.totalorder %v44_v7, 0  ;;  %vm112_vm5 = vcmp.lt.s32.totalorder %v46_v8, 0  ;;  %vm121_vm6 = vcmp.lt.s32.totalorder %v48_v9, 0  ;;  %174 = vst [vmem:[#allocation12 + $0x10] sm:$0xff] %v2412_v15 }
   0xf   :  { %v63_v21 = vmul.u32 128, %v61_v16  ;;  %v122_v23 = vsub.s32 2147483647, %v48_v9  ;;  %vm130_vm7 = vcmp.lt.s32.totalorder %v50_v12, 0  ;;  %v131_v24 = vsub.s32 2147483647, %v50_v12 }
  0x10   :  { %176 = vst [vmem:[#allocation12 + $0x18] sm:$0xff] %v2412_v15  ;;  %v78_v26 = vsel %vm76_vm1, %v77_v14, %v38_v3  ;;  %v87_v27 = vsel %vm85_vm2, %v86_v17, %v40_v5  ;;  %v96_v28 = vsel %vm94_vm3, %v95_v18, %v42_v6  ;;  %v105_v30 = vsel %vm103_vm4, %v104_v19, %v44_v7  ;;  %s2467_s0 = smov 0  }
  0x11   :  { %v64_v25 = vadd.s32 %v63_v21, %v58_v13  ;;  %177 = vst [vmem:[#allocation14] sm:$0xff] %v2413_v29  ;;  %v114_v31 = vsel %vm112_vm5, %v113_v20, %v46_v8  ;;  %v123_v32 = vsel %vm121_vm6, %v122_v23, %v48_v9  ;;  %v132_v33 = vsel %vm130_vm7, %v131_v24, %v50_v12 }
  0x12   :  { %179 = vst [vmem:[#allocation14 + $0x8] sm:$0xff] %v2413_v29 }
  0x13   :  { %vm71_vm8 = vcmp.lt.s32.totalorder %v64_v25, 4096  ;;  %v79_v34 = vadd.s32 512, %v64_v25  ;;  %v88_v35 = vadd.s32 1024, %v64_v25  ;;  %v97_v36 = vadd.s32 1536, %v64_v25  ;;  %147 = vst [vmem:[#allocation16] sm:$0xff] %v64_v25 }
  0x14   :  { %v72_v37 = vsel %vm71_vm8, %v69_v22, 2147483648  ;;  %v106_v38 = vadd.s32 2048, %v64_v25  ;;  %v115_v39 = vadd.s32 2560, %v64_v25  ;;  %v124_v40 = vadd.s32 3072, %v64_v25  ;;  %181 = vst [vmem:[#allocation14 + $0x10] sm:$0xff] %v2413_v29 }
  0x15   :  { %73 = vst [vmem:[#allocation15] sm:$0xff] %v72_v37  ;;  %vm80_vm9 = vcmp.lt.s32.totalorder %v79_v34, 4096  ;;  %vm89_vm10 = vcmp.lt.s32.totalorder %v88_v35, 4096  ;;  %vm98_vm11 = vcmp.lt.s32.totalorder %v97_v36, 4096  ;;  %v133_v41 = vadd.s32 3584, %v64_v25 }
  0x16   :  { %v81_v42 = vsel %vm80_vm9, %v78_v26, 2147483648  ;;  %v90_v43 = vsel %vm89_vm10, %v87_v27, 2147483648  ;;  %v99_v44 = vsel %vm98_vm11, %v96_v28, 2147483648  ;;  %vm107_vm12 = vcmp.lt.s32.totalorder %v106_v38, 4096  ;;  %150 = vst [vmem:[#allocation16 + $0x8] sm:$0xff] %v79_v34 }
  0x17   :  { %82 = vst [vmem:[#allocation15 + $0x8] sm:$0xff] %v81_v42  ;;  %v108_v45 = vsel %vm107_vm12, %v105_v30, 2147483648  ;;  %vm116_vm13 = vcmp.lt.s32.totalorder %v115_v39, 4096  ;;  %vm125_vm14 = vcmp.lt.s32.totalorder %v124_v40, 4096  ;;  %vm134_vm15 = vcmp.lt.s32.totalorder %v133_v41, 4096 }
  0x18   :  { %91 = vst [vmem:[#allocation15 + $0x10] sm:$0xff] %v90_v43  ;;  %v117_v46 = vsel %vm116_vm13, %v114_v31, 2147483648  ;;  %v126_v47 = vsel %vm125_vm14, %v123_v32, 2147483648  ;;  %v135_v48 = vsel %vm134_vm15, %v132_v33, 2147483648 }
  0x19   :  { %100 = vst [vmem:[#allocation15 + $0x18] sm:$0xff] %v99_v44 }
  0x1a   :  { %109 = vst [vmem:[#allocation15 + $0x20] sm:$0xff] %v108_v45 }
  0x1b   :  { %118 = vst [vmem:[#allocation15 + $0x28] sm:$0xff] %v117_v46 }
  0x1c   :  { %127 = vst [vmem:[#allocation15 + $0x30] sm:$0xff] %v126_v47 }
  0x1d   :  { %136 = vst [vmem:[#allocation15 + $0x38] sm:$0xff] %v135_v48 }
  0x1e   :  { %153 = vst [vmem:[#allocation16 + $0x10] sm:$0xff] %v88_v35 }
  0x1f   :  { %156 = vst [vmem:[#allocation16 + $0x18] sm:$0xff] %v97_v36 }
  0x20   :  { %159 = vst [vmem:[#allocation16 + $0x20] sm:$0xff] %v106_v38 }
  0x21   :  { %162 = vst [vmem:[#allocation16 + $0x28] sm:$0xff] %v115_v39 }
  0x22   :  { %165 = vst [vmem:[#allocation16 + $0x30] sm:$0xff] %v124_v40 }
  0x23   :  { %168 = vst [vmem:[#allocation16 + $0x38] sm:$0xff] %v133_v41 }
  0x24   :  { %183 = vst [vmem:[#allocation14 + $0x18] sm:$0xff] %v2413_v29 }
  0x25 LB: > { %v191_v49 = vld [vmem:[#allocation15] sm:$0xff]  ;;  %v195_v51 = vld [vmem:[#allocation15 + $0x8] sm:$0xff]  ;;  %v208_v53 = vld [vmem:[#allocation15 + $0x10] sm:$0xff]  ;;  %s595_s25 = scalar_lea.vmem [#allocation12], %s2408_s0  ;;  %s597_s26 = scalar_lea.vmem [#allocation14], %s2408_s0  ;;  %s2408_s0 = sphi %s2467_s0, %s190_s0  }
  0x26   : > { %v192_v50 = vld [vmem:[#allocation16] sm:$0xff]  ;;  %v197_v52 = vld [vmem:[#allocation16 + $0x8] sm:$0xff]  ;;  %vm199_vm0 = vcmp.gt.s32.totalorder %v195_v51, %v191_v49  ;;  %vm200_vm1 = vcmp.eq.s32.totalorder %v195_v51, %v191_v49  ;;  %v210_v54 = vld [vmem:[#allocation16 + $0x10] sm:$0xff]  ;;  %s190_s0 = sadd.s32 1, %s2408_s0  }
  0x27   : > { %vm201_vm2 = vcmp.lt.s32.totalorder %v197_v52, %v192_v50  ;;  %v221_v57 = vld [vmem:[#allocation15 + $0x18] sm:$0xff]  ;;  %v234_v61 = vld [vmem:[#allocation15 + $0x20] sm:$0xff]  ;;  %v247_v1 = vld [vmem:[#allocation15 + $0x28] sm:$0xff]  ;;  %p187_p2 = scmp.ge.s32.totalorder %s190_s0, 32  }
  0x28   : > { %vm202_vm3 = vmand %vm200_vm1, %vm201_vm2  ;;  %v223_v58 = vld [vmem:[#allocation16 + $0x18] sm:$0xff]  ;;  %v236_v62 = vld [vmem:[#allocation16 + $0x20] sm:$0xff] }
  0x29   : > { %vm203_vm4 = vmor %vm199_vm0, %vm202_vm3  ;;  %v249_v2 = vld [vmem:[#allocation16 + $0x28] sm:$0xff]  ;;  %v260_v6 = vld [vmem:[#allocation15 + $0x30] sm:$0xff] }
  0x2a   : > { %v204_v55 = vsel %vm203_vm4, %v195_v51, %v191_v49  ;;  %v205_v56 = vsel %vm203_vm4, %v197_v52, %v192_v50  ;;  %v262_v7 = vld [vmem:[#allocation16 + $0x30] sm:$0xff]  ;;  %v273_v11 = vld [vmem:[#allocation15 + $0x38] sm:$0xff] }
  0x2b   : > { %vm212_vm5 = vcmp.gt.s32.totalorder %v208_v53, %v204_v55  ;;  %vm213_vm6 = vcmp.eq.s32.totalorder %v208_v53, %v204_v55  ;;  %vm214_vm7 = vcmp.lt.s32.totalorder %v210_v54, %v205_v56  ;;  %v275_v12 = vld [vmem:[#allocation16 + $0x38] sm:$0xff] }
  0x2c   : > { %vm215_vm8 = vmand %vm213_vm6, %vm214_vm7 }
  0x2d   : > { %vm216_vm9 = vmor %vm212_vm5, %vm215_vm8 }
  0x2e   : > { %v217_v59 = vsel %vm216_vm9, %v208_v53, %v204_v55  ;;  %v218_v60 = vsel %vm216_vm9, %v210_v54, %v205_v56 }
  0x2f   : > { %vm225_vm10 = vcmp.gt.s32.totalorder %v221_v57, %v217_v59  ;;  %vm226_vm11 = vcmp.eq.s32.totalorder %v221_v57, %v217_v59  ;;  %vm227_vm12 = vcmp.lt.s32.totalorder %v223_v58, %v218_v60 }
  0x30   : > { %vm228_vm13 = vmand %vm226_vm11, %vm227_vm12 }
  0x31   : > { %vm229_vm14 = vmor %vm225_vm10, %vm228_vm13 }
  0x32   : > { %v230_v63 = vsel %vm229_vm14, %v221_v57, %v217_v59  ;;  %v231_v0 = vsel %vm229_vm14, %v223_v58, %v218_v60 }
  0x33   : > { %vm238_vm15 = vcmp.gt.s32.totalorder %v234_v61, %v230_v63  ;;  %vm239_vm0 = vcmp.eq.s32.totalorder %v234_v61, %v230_v63  ;;  %vm240_vm1 = vcmp.lt.s32.totalorder %v236_v62, %v231_v0 }
  0x34   : > { %vm241_vm2 = vmand %vm239_vm0, %vm240_vm1 }
  0x35   : > { %vm242_vm3 = vmor %vm238_vm15, %vm241_vm2 }
  0x36   : > { %v243_v3 = vsel %vm242_vm3, %v234_v61, %v230_v63  ;;  %v244_v5 = vsel %vm242_vm3, %v236_v62, %v231_v0 }
  0x37   : > { %vm251_vm4 = vcmp.gt.s32.totalorder %v247_v1, %v243_v3  ;;  %vm252_vm5 = vcmp.eq.s32.totalorder %v247_v1, %v243_v3  ;;  %vm253_vm6 = vcmp.lt.s32.totalorder %v249_v2, %v244_v5 }
  0x38   : > { %vm254_vm7 = vmand %vm252_vm5, %vm253_vm6 }
  0x39   : > { %vm255_vm8 = vmor %vm251_vm4, %vm254_vm7 }
  0x3a   : > { %v256_v8 = vsel %vm255_vm8, %v247_v1, %v243_v3  ;;  %v257_v9 = vsel %vm255_vm8, %v249_v2, %v244_v5 }
  0x3b   : > { %vm264_vm9 = vcmp.gt.s32.totalorder %v260_v6, %v256_v8  ;;  %vm265_vm10 = vcmp.eq.s32.totalorder %v260_v6, %v256_v8  ;;  %vm266_vm11 = vcmp.lt.s32.totalorder %v262_v7, %v257_v9 }
  0x3c   : > { %vm267_vm12 = vmand %vm265_vm10, %vm266_vm11 }
  0x3d   : > { %vm268_vm13 = vmor %vm264_vm9, %vm267_vm12 }
  0x3e   : > { %v269_v13 = vsel %vm268_vm13, %v260_v6, %v256_v8  ;;  %v270_v14 = vsel %vm268_vm13, %v262_v7, %v257_v9 }
  0x3f   : > { %vm277_vm14 = vcmp.gt.s32.totalorder %v273_v11, %v269_v13  ;;  %vm278_vm15 = vcmp.eq.s32.totalorder %v273_v11, %v269_v13  ;;  %vm279_vm0 = vcmp.lt.s32.totalorder %v275_v12, %v270_v14 }
  0x40   : > { %vm280_vm1 = vmand %vm278_vm15, %vm279_vm0 }
  0x41   : > { %vm281_vm2 = vmor %vm277_vm14, %vm280_vm1 }
  0x42   : > { %v282_v15 = vsel %vm281_vm2, %v273_v11, %v269_v13  ;;  %v283_v16 = vsel %vm281_vm2, %v275_v12, %v270_v14 }
  0x43   : > { %v285_v17 = vrot.slane %v282_v15, 2  ;;  %v286_v18 = vrot.slane %v283_v16, 2 }
  0x45   : > { %vm288_vm3 = vcmp.gt.s32.totalorder %v285_v17, %v282_v15  ;;  %vm289_vm4 = vcmp.eq.s32.totalorder %v285_v17, %v282_v15  ;;  %vm290_vm5 = vcmp.lt.s32.totalorder %v286_v18, %v283_v16 }
  0x46   : > { %vm291_vm6 = vmand %vm289_vm4, %vm290_vm5 }
  0x47   : > { %vm292_vm7 = vmor %vm288_vm3, %vm291_vm6 }
  0x48   : > { %v293_v19 = vsel %vm292_vm7, %v285_v17, %v282_v15  ;;  %v294_v20 = vsel %vm292_vm7, %v286_v18, %v283_v16 }
  0x49   : > { %v296_v21 = vrot.slane %v293_v19, 2  ;;  %v297_v22 = vrot.slane %v294_v20, 2 }
  0x4b   : > { %vm299_vm8 = vcmp.gt.s32.totalorder %v296_v21, %v293_v19  ;;  %vm300_vm9 = vcmp.eq.s32.totalorder %v296_v21, %v293_v19  ;;  %vm301_vm10 = vcmp.lt.s32.totalorder %v297_v22, %v294_v20 }
  0x4c   : > { %vm302_vm11 = vmand %vm300_vm9, %vm301_vm10 }
  0x4d   : > { %vm303_vm12 = vmor %vm299_vm8, %vm302_vm11 }
  0x4e   : > { %v304_v23 = vsel %vm303_vm12, %v296_v21, %v293_v19  ;;  %v305_v24 = vsel %vm303_vm12, %v297_v22, %v294_v20 }
  0x4f   : > { %v307_v25 = vrot.slane %v304_v23, 2  ;;  %v308_v26 = vrot.slane %v305_v24, 2 }
  0x51   : > { %vm310_vm13 = vcmp.gt.s32.totalorder %v307_v25, %v304_v23  ;;  %vm311_vm14 = vcmp.eq.s32.totalorder %v307_v25, %v304_v23  ;;  %vm312_vm15 = vcmp.lt.s32.totalorder %v308_v26, %v305_v24 }
  0x52   : > { %vm313_vm0 = vmand %vm311_vm14, %vm312_vm15 }
  0x53   : > { %vm314_vm1 = vmor %vm310_vm13, %vm313_vm0 }
  0x54   : > { %v316_v27 = vsel %vm314_vm1, %v308_v26, %v305_v24  ;;  %v315_v28 = vsel %vm314_vm1, %v307_v25, %v304_v23 }
  0x55   : > { %350 = vxpose.xlu1.b32.start [1/16] %v316_v27, 128  ;;  %318 = vxpose.xlu0.b32.start [1/16] %v315_v28, 128 }
  0x5d   : > { %351 = vxpose.xlu1.b32.cont [2/16] %v316_v27, 128  ;;  %319 = vxpose.xlu0.b32.cont [2/16] %v315_v28, 128 }
  0x65   : > { %352 = vxpose.xlu1.b32.cont [3/16] %v316_v27, 128  ;;  %320 = vxpose.xlu0.b32.cont [3/16] %v315_v28, 128 }
  0x6d   : > { %353 = vxpose.xlu1.b32.cont [4/16] %v316_v27, 128  ;;  %321 = vxpose.xlu0.b32.cont [4/16] %v315_v28, 128 }
  0x75   : > { %354 = vxpose.xlu1.b32.cont [5/16] %v316_v27, 128  ;;  %322 = vxpose.xlu0.b32.cont [5/16] %v315_v28, 128 }
  0x7d   : > { %355 = vxpose.xlu1.b32.cont [6/16] %v316_v27, 128  ;;  %323 = vxpose.xlu0.b32.cont [6/16] %v315_v28, 128 }
  0x85   : > { %356 = vxpose.xlu1.b32.cont [7/16] %v316_v27, 128  ;;  %324 = vxpose.xlu0.b32.cont [7/16] %v315_v28, 128 }
  0x8d   : > { %357 = vxpose.xlu1.b32.cont [8/16] %v316_v27, 128  ;;  %325 = vxpose.xlu0.b32.cont [8/16] %v315_v28, 128 }
  0x95   : > { %358 = vxpose.xlu1.b32.cont [9/16] %v316_v27, 128  ;;  %326 = vxpose.xlu0.b32.cont [9/16] %v315_v28, 128 }
  0x9d   : > { %359 = vxpose.xlu1.b32.cont [10/16] %v316_v27, 128  ;;  %327 = vxpose.xlu0.b32.cont [10/16] %v315_v28, 128 }
  0xa5   : > { %360 = vxpose.xlu1.b32.cont [11/16] %v316_v27, 128  ;;  %328 = vxpose.xlu0.b32.cont [11/16] %v315_v28, 128 }
  0xad   : > { %361 = vxpose.xlu1.b32.cont [12/16] %v316_v27, 128  ;;  %329 = vxpose.xlu0.b32.cont [12/16] %v315_v28, 128 }
  0xb5   : > { %362 = vxpose.xlu1.b32.cont [13/16] %v316_v27, 128  ;;  %330 = vxpose.xlu0.b32.cont [13/16] %v315_v28, 128 }
  0xbd   : > { %363 = vxpose.xlu1.b32.cont [14/16] %v316_v27, 128  ;;  %331 = vxpose.xlu0.b32.cont [14/16] %v315_v28, 128 }
  0xc5   : > { %364 = vxpose.xlu1.b32.cont [15/16] %v316_v27, 128  ;;  %332 = vxpose.xlu0.b32.cont [15/16] %v315_v28, 128 }
  0xcd   : > { %365 = vxpose.xlu1.b32.end [16/16] %v316_v27, 128  ;;  %333 = vxpose.xlu0.b32.end [16/16] %v315_v28, 128 }
  0xf9   : > { %v366_v29 = vpop.trf.xlu1  ;;  %v334_v30 = vpop.trf.xlu0 }
 0x101   : > { %v367_v31 = vpop.trf.xlu1  ;;  %v335_v32 = vpop.trf.xlu0 }
 0x102   : > { %vm386_vm2 = vcmp.lt.s32.totalorder %v367_v31, %v366_v29  ;;  %vm384_vm3 = vcmp.gt.s32.totalorder %v335_v32, %v334_v30  ;;  %vm385_vm4 = vcmp.eq.s32.totalorder %v335_v32, %v334_v30 }
 0x103   : > { %vm387_vm5 = vmand %vm385_vm4, %vm386_vm2 }
 0x104   : > { %vm388_vm6 = vmor %vm384_vm3, %vm387_vm5 }
 0x105   : > { %v389_v33 = vsel %vm388_vm6, %v335_v32, %v334_v30  ;;  %v390_v34 = vsel %vm388_vm6, %v367_v31, %v366_v29 }
 0x109   : > { %v368_v35 = vpop.trf.xlu1  ;;  %v336_v36 = vpop.trf.xlu0 }
 0x10a   : > { %vm395_vm7 = vcmp.lt.s32.totalorder %v368_v35, %v390_v34  ;;  %vm393_vm8 = vcmp.gt.s32.totalorder %v336_v36, %v389_v33  ;;  %vm394_vm9 = vcmp.eq.s32.totalorder %v336_v36, %v389_v33 }
 0x10b   : > { %vm396_vm10 = vmand %vm394_vm9, %vm395_vm7 }
 0x10c   : > { %vm397_vm11 = vmor %vm393_vm8, %vm396_vm10 }
 0x10d   : > { %v398_v37 = vsel %vm397_vm11, %v336_v36, %v389_v33  ;;  %v399_v38 = vsel %vm397_vm11, %v368_v35, %v390_v34 }
 0x111   : > { %v369_v39 = vpop.trf.xlu1  ;;  %v337_v40 = vpop.trf.xlu0 }
 0x112   : > { %vm404_vm12 = vcmp.lt.s32.totalorder %v369_v39, %v399_v38  ;;  %vm402_vm13 = vcmp.gt.s32.totalorder %v337_v40, %v398_v37  ;;  %vm403_vm14 = vcmp.eq.s32.totalorder %v337_v40, %v398_v37 }
 0x113   : > { %vm405_vm15 = vmand %vm403_vm14, %vm404_vm12 }
 0x114   : > { %vm406_vm0 = vmor %vm402_vm13, %vm405_vm15 }
 0x115   : > { %v407_v41 = vsel %vm406_vm0, %v337_v40, %v398_v37  ;;  %v408_v42 = vsel %vm406_vm0, %v369_v39, %v399_v38 }
 0x119   : > { %v370_v43 = vpop.trf.xlu1  ;;  %v338_v44 = vpop.trf.xlu0 }
 0x11a   : > { %vm413_vm1 = vcmp.lt.s32.totalorder %v370_v43, %v408_v42  ;;  %vm411_vm2 = vcmp.gt.s32.totalorder %v338_v44, %v407_v41  ;;  %vm412_vm3 = vcmp.eq.s32.totalorder %v338_v44, %v407_v41 }
 0x11b   : > { %vm414_vm4 = vmand %vm412_vm3, %vm413_vm1 }
 0x11c   : > { %vm415_vm5 = vmor %vm411_vm2, %vm414_vm4 }
 0x11d   : > { %v416_v45 = vsel %vm415_vm5, %v338_v44, %v407_v41  ;;  %v417_v46 = vsel %vm415_vm5, %v370_v43, %v408_v42 }
 0x121   : > { %v371_v47 = vpop.trf.xlu1  ;;  %v339_v48 = vpop.trf.xlu0 }
 0x122   : > { %vm422_vm6 = vcmp.lt.s32.totalorder %v371_v47, %v417_v46  ;;  %vm420_vm7 = vcmp.gt.s32.totalorder %v339_v48, %v416_v45  ;;  %vm421_vm8 = vcmp.eq.s32.totalorder %v339_v48, %v416_v45 }
 0x123   : > { %vm423_vm9 = vmand %vm421_vm8, %vm422_vm6 }
 0x124   : > { %vm424_vm10 = vmor %vm420_vm7, %vm423_vm9 }
 0x125   : > { %v425_v49 = vsel %vm424_vm10, %v339_v48, %v416_v45  ;;  %v426_v50 = vsel %vm424_vm10, %v371_v47, %v417_v46 }
 0x129   : > { %v372_v51 = vpop.trf.xlu1  ;;  %v340_v52 = vpop.trf.xlu0 }
 0x12a   : > { %vm431_vm11 = vcmp.lt.s32.totalorder %v372_v51, %v426_v50  ;;  %vm429_vm12 = vcmp.gt.s32.totalorder %v340_v52, %v425_v49  ;;  %vm430_vm13 = vcmp.eq.s32.totalorder %v340_v52, %v425_v49 }
 0x12b   : > { %vm432_vm14 = vmand %vm430_vm13, %vm431_vm11 }
 0x12c   : > { %vm433_vm15 = vmor %vm429_vm12, %vm432_vm14 }
 0x12d   : > { %v434_v53 = vsel %vm433_vm15, %v340_v52, %v425_v49  ;;  %v435_v54 = vsel %vm433_vm15, %v372_v51, %v426_v50 }
 0x131   : > { %v373_v55 = vpop.trf.xlu1  ;;  %v341_v56 = vpop.trf.xlu0 }
 0x132   : > { %vm440_vm0 = vcmp.lt.s32.totalorder %v373_v55, %v435_v54  ;;  %vm438_vm1 = vcmp.gt.s32.totalorder %v341_v56, %v434_v53  ;;  %vm439_vm2 = vcmp.eq.s32.totalorder %v341_v56, %v434_v53 }
 0x133   : > { %vm441_vm3 = vmand %vm439_vm2, %vm440_vm0 }
 0x134   : > { %vm442_vm4 = vmor %vm438_vm1, %vm441_vm3 }
 0x135   : > { %v443_v57 = vsel %vm442_vm4, %v341_v56, %v434_v53  ;;  %v444_v58 = vsel %vm442_vm4, %v373_v55, %v435_v54 }
 0x139   : > { %v374_v59 = vpop.trf.xlu1  ;;  %v342_v60 = vpop.trf.xlu0 }
 0x13a   : > { %vm449_vm5 = vcmp.lt.s32.totalorder %v374_v59, %v444_v58  ;;  %vm447_vm6 = vcmp.gt.s32.totalorder %v342_v60, %v443_v57  ;;  %vm448_vm7 = vcmp.eq.s32.totalorder %v342_v60, %v443_v57 }
 0x13b   : > { %vm450_vm8 = vmand %vm448_vm7, %vm449_vm5 }
 0x13c   : > { %vm451_vm9 = vmor %vm447_vm6, %vm450_vm8 }
 0x13d   : > { %v452_v61 = vsel %vm451_vm9, %v342_v60, %v443_v57  ;;  %v453_v62 = vsel %vm451_vm9, %v374_v59, %v444_v58  ;;  %v2414_v60 = vmov 2147483648  }
 0x141   : > { %v375_v63 = vpop.trf.xlu1  ;;  %v343_v0 = vpop.trf.xlu0 }
 0x142   : > { %vm458_vm10 = vcmp.lt.s32.totalorder %v375_v63, %v453_v62  ;;  %vm456_vm11 = vcmp.gt.s32.totalorder %v343_v0, %v452_v61  ;;  %vm457_vm12 = vcmp.eq.s32.totalorder %v343_v0, %v452_v61 }
 0x143   : > { %vm459_vm13 = vmand %vm457_vm12, %vm458_vm10 }
 0x144   : > { %vm460_vm14 = vmor %vm456_vm11, %vm459_vm13 }
 0x145   : > { %v461_v1 = vsel %vm460_vm14, %v343_v0, %v452_v61  ;;  %v462_v2 = vsel %vm460_vm14, %v375_v63, %v453_v62  ;;  %v2415_v61 = vmov 2147483647  }
 0x149   : > { %v376_v3 = vpop.trf.xlu1  ;;  %v344_v5 = vpop.trf.xlu0 }
 0x14a   : > { %vm467_vm15 = vcmp.lt.s32.totalorder %v376_v3, %v462_v2  ;;  %vm465_vm0 = vcmp.gt.s32.totalorder %v344_v5, %v461_v1  ;;  %vm466_vm1 = vcmp.eq.s32.totalorder %v344_v5, %v461_v1 }
 0x14b   : > { %vm468_vm2 = vmand %vm466_vm1, %vm467_vm15 }
 0x14c   : > { %vm469_vm3 = vmor %vm465_vm0, %vm468_vm2 }
 0x14d   : > { %v470_v6 = vsel %vm469_vm3, %v344_v5, %v461_v1  ;;  %v471_v7 = vsel %vm469_vm3, %v376_v3, %v462_v2 }
 0x151   : > { %v377_v8 = vpop.trf.xlu1  ;;  %v345_v9 = vpop.trf.xlu0 }
 0x152   : > { %vm476_vm4 = vcmp.lt.s32.totalorder %v377_v8, %v471_v7  ;;  %vm474_vm5 = vcmp.gt.s32.totalorder %v345_v9, %v470_v6  ;;  %vm475_vm6 = vcmp.eq.s32.totalorder %v345_v9, %v470_v6 }
 0x153   : > { %vm477_vm7 = vmand %vm475_vm6, %vm476_vm4 }
 0x154   : > { %vm478_vm8 = vmor %vm474_vm5, %vm477_vm7 }
 0x155   : > { %v479_v11 = vsel %vm478_vm8, %v345_v9, %v470_v6  ;;  %v480_v12 = vsel %vm478_vm8, %v377_v8, %v471_v7  ;;  %v712_v7 = vld [vmem:[#allocation11 + $0x10] sm:$0xff] (%p187_p2)  ;;  %v713_v9 = vld [vmem:[#allocation13] sm:$0xff] (%p187_p2) }
 0x159   : > { %v378_v13 = vpop.trf.xlu1  ;;  %v346_v14 = vpop.trf.xlu0 }
 0x15a   : > { %vm485_vm9 = vcmp.lt.s32.totalorder %v378_v13, %v480_v12  ;;  %vm483_vm10 = vcmp.gt.s32.totalorder %v346_v14, %v479_v11  ;;  %vm484_vm11 = vcmp.eq.s32.totalorder %v346_v14, %v479_v11 }
 0x15b   : > { %vm486_vm12 = vmand %vm484_vm11, %vm485_vm9 }
 0x15c   : > { %vm487_vm13 = vmor %vm483_vm10, %vm486_vm12 }
 0x15d   : > { %v488_v15 = vsel %vm487_vm13, %v346_v14, %v479_v11  ;;  %v489_v16 = vsel %vm487_vm13, %v378_v13, %v480_v12  ;;  %v2489_v11 = vld [vmem:[#allocation11] sm:$0xff] (%p187_p2)  ;;  %v2491_v12 = vld [vmem:[#allocation13 + $0x18] sm:$0xff] (%p187_p2)  ;;  %v2501_v14 = vld [vmem:[#allocation13 + $0x8] sm:$0xff] (%p187_p2) }
 0x15e   :  { %v2499_v13 = vld [vmem:[#allocation11 + $0x18] sm:$0xff] (%p187_p2) }
 0x161   : > { %v379_v17 = vpop.trf.xlu1  ;;  %v347_v18 = vpop.trf.xlu0 }
 0x162   : > { %vm494_vm14 = vcmp.lt.s32.totalorder %v379_v17, %v489_v16  ;;  %vm492_vm15 = vcmp.gt.s32.totalorder %v347_v18, %v488_v15  ;;  %vm493_vm0 = vcmp.eq.s32.totalorder %v347_v18, %v488_v15 }
 0x163   : > { %vm495_vm1 = vmand %vm493_vm0, %vm494_vm14 }
 0x164   : > { %vm496_vm2 = vmor %vm492_vm15, %vm495_vm1 }
 0x165   : > { %v497_v19 = vsel %vm496_vm2, %v347_v18, %v488_v15  ;;  %v498_v20 = vsel %vm496_vm2, %v379_v17, %v489_v16  ;;  %v2505_v15 = vld [vmem:[#allocation11 + $0x8] sm:$0xff] (%p187_p2)  ;;  %v2507_v16 = vld [vmem:[#allocation13 + $0x10] sm:$0xff] (%p187_p2) }
 0x169   : > { %v380_v21 = vpop.trf.xlu1  ;;  %v348_v22 = vpop.trf.xlu0 }
 0x16a   : > { %vm503_vm3 = vcmp.lt.s32.totalorder %v380_v21, %v498_v20  ;;  %vm501_vm4 = vcmp.gt.s32.totalorder %v348_v22, %v497_v19  ;;  %vm502_vm5 = vcmp.eq.s32.totalorder %v348_v22, %v497_v19 }
 0x16b   : > { %vm504_vm6 = vmand %vm502_vm5, %vm503_vm3 }
 0x16c   : > { %vm505_vm7 = vmor %vm501_vm4, %vm504_vm6 }
 0x16d   : > { %v506_v23 = vsel %vm505_vm7, %v348_v22, %v497_v19  ;;  %v507_v24 = vsel %vm505_vm7, %v380_v21, %v498_v20 }
 0x171   : > { %v381_v25 = vpop.trf.xlu1  ;;  %v349_v26 = vpop.trf.xlu0 }
 0x172   : > { %vm512_vm8 = vcmp.lt.s32.totalorder %v381_v25, %v507_v24  ;;  %vm510_vm9 = vcmp.gt.s32.totalorder %v349_v26, %v506_v23  ;;  %vm511_vm10 = vcmp.eq.s32.totalorder %v349_v26, %v506_v23 }
 0x173   : > { %vm513_vm11 = vmand %vm511_vm10, %vm512_vm8 }
 0x174   : > { %vm514_vm12 = vmor %vm510_vm9, %vm513_vm11 }
 0x175   : > { %v515_v27 = vsel %vm514_vm12, %v349_v26, %v506_v23  ;;  %v516_v28 = vsel %vm514_vm12, %v381_v25, %v507_v24 }
 0x176   : > { %v518_v29 = vrot.slane %v515_v27, 1  ;;  %v519_v30 = vrot.slane %v516_v28, 1 }
 0x178   : > { %vm521_vm13 = vcmp.gt.s32.totalorder %v518_v29, %v515_v27  ;;  %vm522_vm14 = vcmp.eq.s32.totalorder %v518_v29, %v515_v27  ;;  %vm523_vm15 = vcmp.lt.s32.totalorder %v519_v30, %v516_v28 }
 0x179   : > { %vm524_vm0 = vmand %vm522_vm14, %vm523_vm15 }
 0x17a   : > { %vm525_vm1 = vmor %vm521_vm13, %vm524_vm0 }
 0x17b   : > { %v526_v31 = vsel %vm525_vm1, %v518_v29, %v515_v27  ;;  %v527_v32 = vsel %vm525_vm1, %v519_v30, %v516_v28  ;;  %v3101_v27 = vmov (%p187_p2), 0  ;;  %v2416_v30 = vmov (%p187_p2), 839939668  }
 0x17c   : > { %v529_v33 = vrot.slane %v526_v31, 1  ;;  %v530_v34 = vrot.slane %v527_v32, 1 }
 0x17e   : > { %vm532_vm2 = vcmp.gt.s32.totalorder %v529_v33, %v526_v31  ;;  %vm533_vm3 = vcmp.eq.s32.totalorder %v529_v33, %v526_v31  ;;  %vm534_vm4 = vcmp.lt.s32.totalorder %v530_v34, %v527_v32 }
 0x17f   : > { %vm535_vm5 = vmand %vm533_vm3, %vm534_vm4 }
 0x180   : > { %vm536_vm6 = vmor %vm532_vm2, %vm535_vm5 }
 0x181   : > { %v537_v35 = vsel %vm536_vm6, %v529_v33, %v526_v31  ;;  %v538_v36 = vsel %vm536_vm6, %v530_v34, %v527_v32  ;;  %v895_v31 = vunpack.c.l.s4 (%p187_p2), %v2416_v30 }
 0x182   : > { %v540_v37 = vrot.slane %v537_v35, 1  ;;  %v541_v38 = vrot.slane %v538_v36, 1 }
 0x184   : > { %vm545_vm7 = vcmp.lt.s32.totalorder %v541_v38, %v538_v36  ;;  %vm543_vm8 = vcmp.gt.s32.totalorder %v540_v37, %v537_v35  ;;  %vm544_vm9 = vcmp.eq.s32.totalorder %v540_v37, %v537_v35 }
 0x185   : > { %vm546_vm10 = vmand %vm544_vm9, %vm545_vm7 }
 0x186   : > { %vm547_vm11 = vmor %vm543_vm8, %vm546_vm10 }
 0x187   : > { %v548_v39 = vsel %vm547_vm11, %v540_v37, %v537_v35  ;;  %v549_v40 = vsel %vm547_vm11, %v541_v38, %v538_v36 }
 0x188   : > { %v551_v41 = vrot.slane %v548_v39, 1  ;;  %v552_v42 = vrot.slane %v549_v40, 1 }
 0x18a   : > { %vm554_vm12 = vcmp.gt.s32.totalorder %v551_v41, %v548_v39  ;;  %vm555_vm13 = vcmp.eq.s32.totalorder %v551_v41, %v548_v39  ;;  %vm556_vm14 = vcmp.lt.s32.totalorder %v552_v42, %v549_v40 }
 0x18b   : > { %vm557_vm15 = vmand %vm555_vm13, %vm556_vm14 }
 0x18c   : > { %vm558_vm0 = vmor %vm554_vm12, %vm557_vm15 }
 0x18d   : > { %v559_v43 = vsel %vm558_vm0, %v551_v41, %v548_v39  ;;  %v560_v44 = vsel %vm558_vm0, %v552_v42, %v549_v40  ;;  %v2569_v40 = vunpack.c.0.s8 (%p187_p2), %v895_v31  ;;  %v910_v41 = vand.u32 (%p187_p2), 4, %v2456_v10 }
 0x18e   : > { %v562_v45 = vrot.slane %v559_v43, 1  ;;  %v563_v46 = vrot.slane %v560_v44, 1  ;;  %v2417_v42 = vmov (%p187_p2), 1417023538  }
 0x190   : > { %vm565_vm1 = vcmp.gt.s32.totalorder %v562_v45, %v559_v43  ;;  %vm566_vm2 = vcmp.eq.s32.totalorder %v562_v45, %v559_v43  ;;  %vm567_vm3 = vcmp.lt.s32.totalorder %v563_v46, %v560_v44 }
 0x191   : > { %vm568_vm4 = vmand %vm566_vm2, %vm567_vm3 }
 0x192   : > { %vm569_vm5 = vmor %vm565_vm1, %vm568_vm4 }
 0x193   : > { %v570_v47 = vsel %vm569_vm5, %v562_v45, %v559_v43  ;;  %v571_v48 = vsel %vm569_vm5, %v563_v46, %v560_v44  ;;  %v917_v43 = vunpack.c.l.s4 (%p187_p2), %v2417_v42 }
 0x194   : > { %v573_v49 = vrot.slane %v570_v47, 1  ;;  %v574_v50 = vrot.slane %v571_v48, 1 }
 0x196   : > { %vm576_vm6 = vcmp.gt.s32.totalorder %v573_v49, %v570_v47  ;;  %vm577_vm7 = vcmp.eq.s32.totalorder %v573_v49, %v570_v47  ;;  %vm578_vm8 = vcmp.lt.s32.totalorder %v574_v50, %v571_v48 }
 0x197   : > { %vm579_vm9 = vmand %vm577_vm7, %vm578_vm8 }
 0x198   : > { %vm580_vm10 = vmor %vm576_vm6, %vm579_vm9 }
 0x199   : > { %v581_v51 = vsel %vm580_vm10, %v573_v49, %v570_v47  ;;  %v582_v52 = vsel %vm580_vm10, %v574_v50, %v571_v48 }
 0x19a   : > { %v584_v53 = vrot.slane %v581_v51, 1  ;;  %v585_v54 = vrot.slane %v582_v52, 1 }
 0x19c   : > { %vm587_vm11 = vcmp.gt.s32.totalorder %v584_v53, %v581_v51  ;;  %vm588_vm12 = vcmp.eq.s32.totalorder %v584_v53, %v581_v51  ;;  %vm589_vm13 = vcmp.lt.s32.totalorder %v585_v54, %v582_v52 }
 0x19d   : > { %vm590_vm14 = vmand %vm588_vm12, %vm589_vm13 }
 0x19e   : > { %vm591_vm15 = vmor %vm587_vm11, %vm590_vm14 }
 0x19f   : > { %v593_v55 = vsel %vm591_vm15, %v585_v54, %v582_v52  ;;  %v592_v56 = vsel %vm591_vm15, %v584_v53, %v581_v51  ;;  %v3103_v52 = vmov (%p187_p2), 0  ;;  %v3105_v53 = vmov (%p187_p2), 0 }
 0x1a0   : > { %600 = vxpose.xlu2.b32.start.end [1/1] (short) (narrow) %v593_v55, 8  ;;  %596 = vst [vmem:[%s595_s25] sm:$0x1] %v592_v56  ;;  %v2605_v56 = vunpack.c.0.s8 (%p187_p2), %v917_v43 }
 0x1a1   : > { %598 = vst [vmem:[%s597_s26] sm:$0x1] %v593_v55 }
 0x1a7   :  { %v684_v0 = vld [vmem:[#allocation12 + $0x1f] ss:$-1 sm:$0xff] (%p187_p2)  ;;  %v2479_v2 = vld [vmem:[#allocation12 + $0xf] ss:$-1 sm:$0xff] (%p187_p2)  ;;  %v2481_v3 = vld [vmem:[#allocation12 + $0x17] ss:$-1 sm:$0xff] (%p187_p2) }
 0x1a8   :  { %v691_v1 = vld [vmem:[#allocation14 + $0x1f] ss:$-1 sm:$0xff] (%p187_p2)  ;;  %v2483_v5 = vld [vmem:[#allocation14 + $0xf] ss:$-1 sm:$0xff] (%p187_p2)  ;;  %v2485_v6 = vld [vmem:[#allocation14 + $0x17] ss:$-1 sm:$0xff] (%p187_p2)  ;;  %vm718_vm2 = vcmp.gt.s32.totalorder (%p187_p2), %v712_v7, %v684_v0  ;;  %vm719_vm3 = vcmp.eq.s32.totalorder (%p187_p2), %v712_v7, %v684_v0  ;;  %vm743_vm5 = vcmp.eq.s32.totalorder (%p187_p2), %v2489_v11, %v2481_v3  ;;  %vm742_vm8 = vcmp.gt.s32.totalorder (%p187_p2), %v2489_v11, %v2481_v3 }
 0x1a9   :  { %v2487_v8 = vld [vmem:[#allocation12 + $0x7] ss:$-1 sm:$0xff] (%p187_p2)  ;;  %vm720_vm4 = vcmp.lt.s32.totalorder (%p187_p2), %v713_v9, %v691_v1  ;;  %vm744_vm6 = vcmp.lt.s32.totalorder (%p187_p2), %v2491_v12, %v2485_v6  ;;  %vm771_vm10 = vcmp.eq.s32.totalorder (%p187_p2), %v2499_v13, %v2479_v2  ;;  %vm772_vm11 = vcmp.lt.s32.totalorder (%p187_p2), %v2501_v14, %v2483_v5 }
 0x1aa   :  { %vm721_vm7 = vmand (%p187_p2), %vm719_vm3, %vm720_vm4  ;;  %vm770_vm13 = vcmp.gt.s32.totalorder (%p187_p2), %v2499_v13, %v2479_v2  ;;  %vm799_vm15 = vcmp.eq.s32.totalorder (%p187_p2), %v2505_v15, %v2487_v8 }
 0x1ab   :  { %vm722_vm9 = vmor (%p187_p2), %vm718_vm2, %vm721_vm7  ;;  %vm798_vm2 = vcmp.gt.s32.totalorder (%p187_p2), %v2505_v15, %v2487_v8 }
 0x1ac   :  { %v2513_v17 = vsel (%p187_p2), %vm722_vm9, %v684_v0, %v712_v7  ;;  %v2515_v18 = vsel (%p187_p2), %vm722_vm9, %v691_v1, %v713_v9  ;;  %vm745_vm12 = vmand (%p187_p2), %vm743_vm5, %vm744_vm6  ;;  %v723_v20 = vsel (%p187_p2), %vm722_vm9, %v712_v7, %v684_v0  ;;  %v727_v21 = vsel (%p187_p2), %vm722_vm9, %v713_v9, %v691_v1 }
 0x1ad   :  { %vm2519_vm14 = vmor (%p187_p2), %vm742_vm8, %vm745_vm12 }
 0x1ae   :  { %v748_v23 = vsel (%p187_p2), %vm2519_vm14, %v2489_v11, %v2481_v3  ;;  %v754_v24 = vsel (%p187_p2), %vm2519_vm14, %v2491_v12, %v2485_v6 }
 0x239   : > { %v616_v57 = vpop.trf.xlu2 }
 0x23a   : > { %v655_v58 = vrot.slane %v616_v57, 1  ;;  %2380 = vpush %v616_v57 }
 0x23c   : > { %2382 = vpush %v655_v58 }
 0x26b   : > { %s2381_s27 = spop %2380 }
 0x26c   : > { %s633_s28 = sshrl.u32 %s2381_s27, 9  ;;  %s635_s29 = ssub.s32 0, %s2381_s27 }
 0x26d   : > { %p634_p0 = scmp.lt.s32.totalorder %s2381_s27, 0  ;;  %s2372_s30 = smin.u32 %s2381_s27, %s635_s29 }
 0x26e   : > { %s637_s3 = sand.u32 511, %s2372_s30   ;;  %s2374_s4 = sshll.u32 %s633_s28, 3 }
 0x26f   : > { %s638_s5 = ssub.s32 0, %s637_s3  ;;  %s2383_s6 = spop %2382 }
 0x270   : > { %s3160_s5 = smov (!%p634_p0, %s638_s5), %s637_s3  ;;  %s659_s10 = ssub.s32 0, %s2383_s6 }
 0x271   : > { %s640_s7 = sshrl.u32 %s3160_s5, 7  ;;  %s642_s8 = sand.u32 127, %s3160_s5  }
 0x272   : > { %s2373_s9 = sshll.u32 %s640_s7, 8  ;;  %s2376_s12 = smin.u32 %s2383_s6, %s659_s10 }
 0x273   : > { %s643_s11 = sadd.s32 %s2373_s9, %s642_s8  ;;  %p658_p1 = scmp.lt.s32.totalorder %s2383_s6, 0 }
 0x274   : > { %v645_v59 = vstv %s643_s11  ;;  %s661_s13 = sand.u32 511, %s2376_s12   ;;  %s649_s15 = scalar_lea.vmem [#allocation15], %s2374_s4 }
 0x275   : > { %vm647_vm0 = vcmp.eq.s32.totalorder %v57_v4, %v645_v59  ;;  %s662_s14 = ssub.s32 0, %s661_s13  ;;  %s652_s16 = scalar_lea.vmem [#allocation16], %s2374_s4  ;;  %v932_v59 = vand.u32 (%p187_p2), 2, %v2456_v10 }
 0x276   : > { %650 = vst.msk [vmem:[%s649_s15] sm:$0xff] %vm647_vm0, %v2414_v60  ;;  %s3162_s14 = smov (!%p658_p1, %s662_s14), %s661_s13  ;;  %s657_s17 = sshrl.u32 %s2383_s6, 9 }
 0x277   : > { %653 = vst.msk [vmem:[%s652_s16] sm:$0xff] %vm647_vm0, %v2415_v61  ;;  %s664_s18 = sshrl.u32 %s3162_s14, 7  ;;  %s666_s19 = sand.u32 127, %s3162_s14  }
 0x278   : > { %s2377_s20 = sshll.u32 %s664_s18, 8  ;;  %s2378_s22 = sshll.u32 %s657_s17, 3 }
 0x279   : > { %s667_s21 = sadd.s32 %s2377_s20, %s666_s19  ;;  %s673_s23 = scalar_lea.vmem [#allocation15], %s2378_s22 }
 0x27a   : > { %v669_v62 = vstv %s667_s21  ;;  %s676_s24 = scalar_lea.vmem [#allocation16], %s2378_s22 }
 0x27b   : > { %v670_v63 = vadd.s32 128, %v669_v62  ;;  %189 = sbr.rel (!%p187_p2) target bundleno = 37 (0x25), region = 239 }
 0x27d   : > { %vm671_vm1 = vcmp.eq.s32.totalorder %v57_v4, %v670_v63  ;;  %v2493_v4 = vld [vmem:[#allocation14 + $0x7] ss:$-1 sm:$0xff] (%p187_p2) }
 0x27e   : > { %674 = vst.msk [vmem:[%s673_s23] sm:$0xff] %vm671_vm1, %v2414_v60  ;;  %vm800_vm0 = vcmp.lt.s32.totalorder (%p187_p2), %v2507_v16, %v2493_v4  ;;  %v2418_v60 = vmov (%p187_p2), 1732584193  }
 0x27f   : > { %677 = vst.msk [vmem:[%s676_s24] sm:$0xff] %vm671_vm1, %v2415_v61  ;;  %vm773_vm1 = vmand (%p187_p2), %vm771_vm10, %vm772_vm11  ;;  %v939_v61 = vunpack.c.l.s4 (%p187_p2), %v2418_v60  ;;  %v3119_v60 = vmov (%p187_p2), 0 }
 0x280   :  { %vm2529_vm3 = vmor %vm770_vm13, %vm773_vm1 }
 0x281   :  { %v776_v25 = vsel %vm2529_vm3, %v2499_v13, %v2479_v2  ;;  %v782_v26 = vsel %vm2529_vm3, %v2501_v14, %v2483_v5  ;;  %vm801_vm4 = vmand %vm799_vm15, %vm800_vm0  ;;  %v2620_v62 = vsel %vm2529_vm3, %v2479_v2, %v2499_v13  ;;  %v2626_v63 = vsel %vm2529_vm3, %v2483_v5, %v2501_v14 }
 0x282   :  { %vm2549_vm5 = vmor %vm798_vm2, %vm801_vm4  ;;  %vm825_vm6 = vcmp.gt.s32.totalorder %v723_v20, %v776_v25  ;;  %vm826_vm7 = vcmp.eq.s32.totalorder %v723_v20, %v776_v25  ;;  %vm827_vm8 = vcmp.lt.s32.totalorder %v727_v21, %v782_v26  ;;  %v3107_v5 = vmov 0 }
 0x283   :  { %v3102_v27 = vsel %vm2549_vm5, 4294967295, %v3101_v27  ;;  %v804_v28 = vsel %vm2549_vm5, %v2505_v15, %v2487_v8  ;;  %v810_v29 = vsel %vm2549_vm5, %v2507_v16, %v2493_v4  ;;  %vm828_vm9 = vmand %vm826_vm7, %vm827_vm8  ;;  %v2640_v9 = vunpack.c.0.s8 %v939_v61 }
 0x284   :  { %vm829_vm10 = vmor %vm825_vm6, %vm828_vm9  ;;  %vm849_vm11 = vcmp.gt.s32.totalorder %v748_v23, %v804_v28  ;;  %vm850_vm12 = vcmp.eq.s32.totalorder %v748_v23, %v804_v28  ;;  %vm851_vm13 = vcmp.lt.s32.totalorder %v754_v24, %v810_v29 }
 0x285   :  { %v830_v32 = vsel %vm829_vm10, %v723_v20, %v776_v25  ;;  %v834_v33 = vsel %vm829_vm10, %v727_v21, %v782_v26  ;;  %vm852_vm15 = vmand %vm850_vm12, %vm851_vm13  ;;  %v2561_v34 = vsel %vm829_vm10, %v776_v25, %v723_v20  ;;  %v2563_v35 = vsel %vm829_vm10, %v782_v26, %v727_v21 }
 0x286   :  { %vm853_vm0 = vmor %vm849_vm11, %vm852_vm15  ;;  %vm2589_vm13 = vcmp.ne.s32.totalorder %v910_v41, 0 }
 0x287   :  { %v855_v36 = vsel %vm853_vm0, %v748_v23, %v804_v28  ;;  %v2565_v37 = vsel %vm853_vm0, %v804_v28, %v748_v23  ;;  %v861_v38 = vsel %vm853_vm0, %v754_v24, %v810_v29  ;;  %v2567_v39 = vsel %vm853_vm0, %v810_v29, %v754_v24 }
 0x288   :  { %vm876_vm1 = vcmp.gt.s32.totalorder %v830_v32, %v855_v36  ;;  %vm877_vm2 = vcmp.eq.s32.totalorder %v830_v32, %v855_v36  ;;  %vm878_vm4 = vcmp.lt.s32.totalorder %v834_v33, %v861_v38  ;;  %vm1189_vm7 = vcmp.gt.s32.totalorder %v2561_v34, %v2565_v37 }
 0x289   :  { %vm879_vm6 = vmand %vm877_vm2, %vm878_vm4  ;;  %vm1190_vm8 = vcmp.eq.s32.totalorder %v2561_v34, %v2565_v37  ;;  %vm1191_vm9 = vcmp.lt.s32.totalorder %v2563_v35, %v2567_v39  ;;  %v3106_v53 = vsel %vm2589_vm13, 4294967295, %v3105_v53  ;;  %v954_v23 = vand.u32 1, %v2456_v10 }
 0x28a   :  { %vm880_vm10 = vmor %vm876_vm1, %vm879_vm6  ;;  %v3113_v10 = vmov 0 }
 0x28b   :  { %v881_v44 = vsel %vm880_vm10, %v830_v32, %v855_v36  ;;  %v883_v45 = vsel %vm880_vm10, %v855_v36, %v830_v32  ;;  %v885_v46 = vsel %vm880_vm10, %v834_v33, %v861_v38  ;;  %v887_v47 = vsel %vm880_vm10, %v861_v38, %v834_v33  ;;  %vm1192_vm11 = vmand %vm1190_vm8, %vm1191_vm9 }
 0x28c   :  { %v897_v48 = vperm.slane %v881_v44, %v2569_v40  ;;  %v901_v49 = vperm.slane %v885_v46, %v2569_v40  ;;  %v1042_v50 = vperm.slane %v883_v45, %v2569_v40  ;;  %v1046_v51 = vperm.slane %v887_v47, %v2569_v40  ;;  %vm2585_vm12 = vmor %vm1189_vm7, %vm1192_vm11 }
 0x28d   :  { %v3104_v52 = vsel %vm2585_vm12, 4294967295, %v3103_v52  ;;  %v2597_v54 = vsel %vm2585_vm12, %v2561_v34, %v2565_v37  ;;  %v2603_v55 = vsel %vm2585_vm12, %v2563_v35, %v2567_v39  ;;  %vm2669_vm5 = vcmp.ne.s32.totalorder %v954_v23, 0 }
 0x28e   :  { %vm903_vm15 = vcmp.gt.s32.totalorder %v881_v44, %v897_v48  ;;  %vm904_vm0 = vcmp.eq.s32.totalorder %v881_v44, %v897_v48  ;;  %vm905_vm1 = vcmp.lt.s32.totalorder %v885_v46, %v901_v49  ;;  %vm1049_vm4 = vcmp.eq.s32.totalorder %v883_v45, %v1042_v50 }
 0x28f   :  { %vm906_vm2 = vmand %vm904_vm0, %vm905_vm1  ;;  %vm1050_vm6 = vcmp.lt.s32.totalorder %v887_v47, %v1046_v51  ;;  %v2609_v57 = vperm.slane %v2597_v54, %v2569_v40  ;;  %v2613_v58 = vperm.slane %v2603_v55, %v2569_v40  ;;  %vm1048_vm8 = vcmp.gt.s32.totalorder %v883_v45, %v1042_v50 }
 0x290   :  { %vm907_vm7 = vmor %vm903_vm15, %vm906_vm2  ;;  %vm2636_vm1 = vcmp.ne.s32.totalorder %v932_v59, 0  ;;  %v3114_v10 = vsel %vm2669_vm5, 4294967295, %v3113_v10  ;;  %v2681_v36 = vsel %vm2519_vm14, %v2481_v3, %v2489_v11  ;;  %v2687_v38 = vsel %vm2519_vm14, %v2485_v6, %v2491_v12 }
 0x291   :  { %vm912_vm9 = vmxor %vm907_vm7, %vm2589_vm13  ;;  %vm1217_vm11 = vcmp.eq.s32.totalorder %v2597_v54, %v2609_v57  ;;  %vm1218_vm15 = vcmp.lt.s32.totalorder %v2603_v55, %v2613_v58  ;;  %v3108_v5 = vsel %vm2636_vm1, 4294967295, %v3107_v5  ;;  %vm3115_vm14 = vnez %v3102_v27 }
 0x292   :  { %v913_v0 = vsel %vm912_vm9, %v881_v44, %v897_v48  ;;  %v914_v1 = vsel %vm912_vm9, %v885_v46, %v901_v49  ;;  %vm1051_vm10 = vmand %vm1049_vm4, %vm1050_vm6  ;;  %v2703_v12 = vsel %vm3115_vm14, %v2487_v8, %v2505_v15  ;;  %v2709_v19 = vsel %vm3115_vm14, %v2493_v4, %v2507_v16 }
 0x293   :  { %v919_v2 = vperm.slane %v913_v0, %v2605_v56  ;;  %v923_v7 = vperm.slane %v914_v1, %v2605_v56  ;;  %vm1052_vm0 = vmor %vm1048_vm8, %vm1051_vm10 }
 0x294   :  { %vm1057_vm3 = vmxor %vm1052_vm0, %vm2589_vm13  ;;  %vm1216_vm0 = vcmp.gt.s32.totalorder %v2597_v54, %v2609_v57 }
 0x295   :  { %vm925_vm6 = vcmp.gt.s32.totalorder %v913_v0, %v919_v2  ;;  %vm926_vm7 = vcmp.eq.s32.totalorder %v913_v0, %v919_v2  ;;  %vm927_vm9 = vcmp.lt.s32.totalorder %v914_v1, %v923_v7  ;;  %v1058_v13 = vsel %vm1057_vm3, %v883_v45, %v1042_v50  ;;  %vm2648_vm8 = vmand %vm1217_vm11, %vm1218_vm15 }
 0x296   :  { %vm928_vm10 = vmand %vm926_vm7, %vm927_vm9  ;;  %v1059_v20 = vsel %vm1057_vm3, %v887_v47, %v1046_v51  ;;  %v1064_v21 = vperm.slane %v1058_v13, %v2605_v56 }
 0x297   :  { %vm929_vm12 = vmor %vm925_vm6, %vm928_vm10  ;;  %v1068_v22 = vperm.slane %v1059_v20, %v2605_v56 }
 0x298   :  { %vm934_vm4 = vmxor %vm929_vm12, %vm2636_vm1  ;;  %vm1070_vm11 = vcmp.gt.s32.totalorder %v1058_v13, %v1064_v21  ;;  %vm1071_vm15 = vcmp.eq.s32.totalorder %v1058_v13, %v1064_v21 }
 0x299   :  { %v935_v24 = vsel %vm934_vm4, %v913_v0, %v919_v2  ;;  %v936_v25 = vsel %vm934_vm4, %v914_v1, %v923_v7  ;;  %vm1072_vm3 = vcmp.lt.s32.totalorder %v1059_v20, %v1068_v22  ;;  %vm2663_vm7 = vmor %vm1216_vm0, %vm2648_vm8 }
 0x29a   :  { %v941_v28 = vperm.slane %v935_v24, %v2640_v9  ;;  %v945_v29 = vperm.slane %v936_v25, %v2640_v9  ;;  %vm1073_vm6 = vmand %vm1071_vm15, %vm1072_vm3 }
 0x29b   :  { %vm1074_vm9 = vmor %vm1070_vm11, %vm1073_vm6 }
 0x29c   :  { %vm947_vm12 = vcmp.gt.s32.totalorder %v935_v24, %v941_v28  ;;  %vm948_vm10 = vcmp.eq.s32.totalorder %v935_v24, %v941_v28  ;;  %vm949_vm2 = vcmp.lt.s32.totalorder %v936_v25, %v945_v29  ;;  %vm1079_vm4 = vmxor %vm1074_vm9, %vm2636_vm1 }
 0x29d   :  { %vm950_vm8 = vmand %vm948_vm10, %vm949_vm2  ;;  %v1080_v30 = vsel %vm1079_vm4, %v1058_v13, %v1064_v21  ;;  %v1081_v31 = vsel %vm1079_vm4, %v1059_v20, %v1068_v22 }
 0x29e   :  { %vm951_vm0 = vmor %vm947_vm12, %vm950_vm8  ;;  %v1086_v32 = vperm.slane %v1080_v30, %v2640_v9  ;;  %v1090_v33 = vperm.slane %v1081_v31, %v2640_v9 }
 0x29f   :  { %vm956_vm2 = vmxor %vm951_vm0, %vm2669_vm5  ;;  %vm3118_vm0 = vnez %v3104_v52 }
 0x2a0   :  { %v957_v41 = vsel %vm956_vm2, %v935_v24, %v941_v28  ;;  %v958_v42 = vsel %vm956_vm2, %v936_v25, %v945_v29  ;;  %vm1092_vm11 = vcmp.gt.s32.totalorder %v1080_v30, %v1086_v32  ;;  %vm1093_vm15 = vcmp.eq.s32.totalorder %v1080_v30, %v1086_v32  ;;  %vm1225_vm3 = vmxor %vm2663_vm7, %vm2589_vm13 }
 0x2a1   :  { %v969_v3 = vperm.slane %v957_v41, %v2569_v40  ;;  %v973_v11 = vperm.slane %v958_v42, %v2569_v40  ;;  %vm1094_vm6 = vcmp.lt.s32.totalorder %v1081_v31, %v1090_v33  ;;  %v1226_v6 = vsel %vm1225_vm3, %v2597_v54, %v2609_v57 }
 0x2a2   :  { %vm1095_vm7 = vmand %vm1093_vm15, %vm1094_vm6  ;;  %v1227_v43 = vsel %vm1225_vm3, %v2603_v55, %v2613_v58  ;;  %v1232_v44 = vperm.slane %v1226_v6, %v2605_v56  ;;  %v2724_v4 = vsel %vm3118_vm0, %v2565_v37, %v2561_v34  ;;  %v2730_v15 = vsel %vm3118_vm0, %v2567_v39, %v2563_v35 }
 0x2a3   :  { %vm975_vm9 = vcmp.gt.s32.totalorder %v957_v41, %v969_v3  ;;  %vm976_vm12 = vcmp.eq.s32.totalorder %v957_v41, %v969_v3  ;;  %vm977_vm10 = vcmp.lt.s32.totalorder %v958_v42, %v973_v11  ;;  %vm2715_vm4 = vmor %vm1092_vm11, %vm1095_vm7  ;;  %v1236_v8 = vperm.slane %v1227_v43, %v2605_v56 }
 0x2a4   :  { %vm978_vm8 = vmand %vm976_vm12, %vm977_vm10  ;;  %vm1239_vm11 = vcmp.eq.s32.totalorder %v1226_v6, %v1232_v44  ;;  %vm1238_vm7 = vcmp.gt.s32.totalorder %v1226_v6, %v1232_v44  ;;  %v2746_v34 = vperm.slane %v2724_v4, %v2569_v40  ;;  %v2750_v35 = vperm.slane %v2730_v15, %v2569_v40 }
 0x2a5   :  { %vm979_vm2 = vmor %vm975_vm9, %vm978_vm8  ;;  %vm1240_vm15 = vcmp.lt.s32.totalorder %v1227_v43, %v1236_v8  ;;  %v3127_v29 = vmov 0 }
 0x2a6   :  { %vm984_vm14 = vmxor %vm979_vm2, %vm2589_vm13 }
 0x2a7   :  { %v985_v16 = vsel %vm984_vm14, %v957_v41, %v969_v3  ;;  %v986_v27 = vsel %vm984_vm14, %v958_v42, %v973_v11  ;;  %vm1101_vm9 = vmxor %vm2715_vm4, %vm2669_vm5 }
 0x2a8   :  { %v991_v37 = vperm.slane %v985_v16, %v2605_v56  ;;  %v995_v39 = vperm.slane %v986_v27, %v2605_v56  ;;  %v1102_v46 = vsel %vm1101_vm9, %v1080_v30, %v1086_v32  ;;  %v1103_v47 = vsel %vm1101_vm9, %v1081_v31, %v1090_v33  ;;  %vm1241_vm10 = vmand %vm1239_vm11, %vm1240_vm15 }
 0x2a9   :  { %v1114_v48 = vperm.slane %v1102_v46, %v2569_v40  ;;  %v1118_v49 = vperm.slane %v1103_v47, %v2569_v40  ;;  %vm1242_vm4 = vmor %vm1238_vm7, %vm1241_vm10  ;;  %vm1362_vm9 = vcmp.eq.s32.totalorder %v2724_v4, %v2746_v34  ;;  %vm1363_vm15 = vcmp.lt.s32.totalorder %v2730_v15, %v2750_v35 }
 0x2aa   :  { %vm997_vm8 = vcmp.gt.s32.totalorder %v985_v16, %v991_v37  ;;  %vm998_vm0 = vcmp.eq.s32.totalorder %v985_v16, %v991_v37  ;;  %vm999_vm2 = vcmp.lt.s32.totalorder %v986_v27, %v995_v39  ;;  %vm1247_vm14 = vmxor %vm1242_vm4, %vm2636_vm1 }
 0x2ab   :  { %vm1000_vm12 = vmand %vm998_vm0, %vm999_vm2  ;;  %vm1121_vm3 = vcmp.eq.s32.totalorder %v1102_v46, %v1114_v48  ;;  %vm1122_vm6 = vcmp.lt.s32.totalorder %v1103_v47, %v1118_v49  ;;  %v1248_v50 = vsel %vm1247_vm14, %v1226_v6, %v1232_v44  ;;  %vm1120_vm11 = vcmp.gt.s32.totalorder %v1102_v46, %v1114_v48 }
 0x2ac   :  { %vm1001_vm5 = vmor %vm997_vm8, %vm1000_vm12  ;;  %v1249_v51 = vsel %vm1247_vm14, %v1227_v43, %v1236_v8  ;;  %v1254_v52 = vperm.slane %v1248_v50, %v2640_v9 }
 0x2ad   :  { %vm1006_vm7 = vmxor %vm1001_vm5, %vm2636_vm1  ;;  %v1258_v54 = vperm.slane %v1249_v51, %v2640_v9 }
 0x2ae   :  { %v1007_v55 = vsel %vm1006_vm7, %v985_v16, %v991_v37  ;;  %v1008_v57 = vsel %vm1006_vm7, %v986_v27, %v995_v39  ;;  %vm1123_vm10 = vmand %vm1121_vm3, %vm1122_vm6  ;;  %vm1261_vm4 = vcmp.eq.s32.totalorder %v1248_v50, %v1254_v52 }
 0x2af   :  { %v1013_v58 = vperm.slane %v1007_v55, %v2640_v9  ;;  %v1017_v59 = vperm.slane %v1008_v57, %v2640_v9  ;;  %vm1124_vm12 = vmor %vm1120_vm11, %vm1123_vm10  ;;  %vm1262_vm8 = vcmp.lt.s32.totalorder %v1249_v51, %v1258_v54  ;;  %vm1260_vm11 = vcmp.gt.s32.totalorder %v1248_v50, %v1254_v52 }
 0x2b0   :  { %vm2773_vm0 = vmand %vm1362_vm9, %vm1363_vm15  ;;  %vm3121_vm9 = vnez %v3114_v10 }
 0x2b1   :  { %v3120_v60 = vsel %vm2773_vm0, 4294967295, %v3119_v60  ;;  %vm1129_vm5 = vmxor %vm1124_vm12, %vm2589_vm13  ;;  %vm1019_vm2 = vcmp.gt.s32.totalorder %v1007_v55, %v1013_v58  ;;  %vm1020_vm14 = vcmp.eq.s32.totalorder %v1007_v55, %v1013_v58  ;;  %vm1021_vm3 = vcmp.lt.s32.totalorder %v1008_v57, %v1017_v59 }
 0x2b2   :  { %v1130_v61 = vsel %vm1129_vm5, %v1102_v46, %v1114_v48  ;;  %vm1263_vm6 = vmand %vm1261_vm4, %vm1262_vm8  ;;  %v1131_v0 = vsel %vm1129_vm5, %v1103_v47, %v1118_v49  ;;  %vm1361_vm5 = vcmp.gt.s32.totalorder %v2724_v4, %v2746_v34 }
 0x2b3   :  { %vm1022_vm7 = vmand %vm1020_vm14, %vm1021_vm3  ;;  %v1136_v1 = vperm.slane %v1130_v61, %v2605_v56  ;;  %v1140_v2 = vperm.slane %v1131_v0, %v2605_v56 }
 0x2b4   :  { %vm1023_vm10 = vmor %vm1019_vm2, %vm1022_vm7  ;;  %vm3122_vm2 = vnez %v3108_v5 }
 0x2b5   :  { %vm1028_vm15 = vmxor %vm1023_vm10, %vm3121_vm9  ;;  %vm1142_vm0 = vcmp.gt.s32.totalorder %v1130_v61, %v1136_v1  ;;  %vm1143_vm1 = vcmp.eq.s32.totalorder %v1130_v61, %v1136_v1  ;;  %vm1144_vm12 = vcmp.lt.s32.totalorder %v1131_v0, %v1140_v2 }
 0x2b6   :  { %v1029_v7 = vsel %vm1028_vm15, %v1007_v55, %v1013_v58  ;;  %v1030_v13 = vsel %vm1028_vm15, %v1008_v57, %v1017_v59  ;;  %vm1264_vm13 = vmor %vm1260_vm11, %vm1263_vm6  ;;  %vm3124_vm6 = vnez %v3106_v53 }
 0x2b7   :  { %1032 = vst [vmem:[#allocation11 + $0x10] sm:$0xff] %v1029_v7  ;;  %vm1145_vm4 = vmand %vm1143_vm1, %vm1144_vm12  ;;  %vm3123_vm1 = vnez %v3120_v60  ;;  %vm3126_vm12 = vcmp.eq.s32.totalorder %v2513_v17, %v2620_v62  ;;  %v3149_v60 = vmov 0 }
 0x2b8   :  { %1033 = vst [vmem:[#allocation13] sm:$0xff] %v1030_v13  ;;  %vm1146_vm8 = vmor %vm1142_vm0, %vm1145_vm4 }
 0x2b9   :  { %vm1151_vm14 = vmxor %vm1146_vm8, %vm3122_vm2 }
 0x2ba   :  { %v1152_v14 = vsel %vm1151_vm14, %v1130_v61, %v1136_v1  ;;  %v1153_v20 = vsel %vm1151_vm14, %v1131_v0, %v1140_v2  ;;  %vm1269_vm3 = vmxor %vm1264_vm13, %vm3121_vm9  ;;  %vm3125_vm13 = vcmp.lt.s32.totalorder %v2515_v18, %v2626_v63 }
 0x2bb   :  { %v1158_v21 = vperm.slane %v1152_v14, %v2640_v9  ;;  %v1162_v22 = vperm.slane %v1153_v20, %v2640_v9  ;;  %v1270_v23 = vsel %vm1269_vm3, %v1248_v50, %v1254_v52  ;;  %v1271_v24 = vsel %vm1269_vm3, %v1249_v51, %v1258_v54  ;;  %vm1365_vm0 = vmor %vm1361_vm5, %vm3123_vm1 }
 0x2bc   :  { %v1282_v25 = vperm.slane %v1270_v23, %v2569_v40  ;;  %v1286_v26 = vperm.slane %v1271_v24, %v2569_v40  ;;  %vm1370_vm7 = vmxor %vm1365_vm0, %vm3124_vm6 }
 0x2bd   :  { %vm1164_vm11 = vcmp.gt.s32.totalorder %v1152_v14, %v1158_v21  ;;  %vm1165_vm10 = vcmp.eq.s32.totalorder %v1152_v14, %v1158_v21  ;;  %vm1166_vm15 = vcmp.lt.s32.totalorder %v1153_v20, %v1162_v22  ;;  %v1371_v28 = vsel %vm1370_vm7, %v2724_v4, %v2746_v34  ;;  %vm2805_vm4 = vmand %vm3126_vm12, %vm3125_vm13 }
 0x2be   :  { %v3128_v29 = vsel %vm2805_vm4, 4294967295, %v3127_v29  ;;  %vm1167_vm8 = vmand %vm1165_vm10, %vm1166_vm15  ;;  %vm1289_vm5 = vcmp.eq.s32.totalorder %v1270_v23, %v1282_v25  ;;  %vm1290_vm14 = vcmp.lt.s32.totalorder %v1271_v24, %v1286_v26  ;;  %v1372_v30 = vsel %vm1370_vm7, %v2730_v15, %v2750_v35 }
 0x2bf   :  { %vm1168_vm3 = vmor %vm1164_vm11, %vm1167_vm8  ;;  %vm1288_vm1 = vcmp.gt.s32.totalorder %v1270_v23, %v1282_v25  ;;  %v1377_v31 = vperm.slane %v1371_v28, %v2605_v56  ;;  %v1381_v32 = vperm.slane %v1372_v30, %v2605_v56 }
 0x2c0   :  { %vm1173_vm0 = vmxor %vm1168_vm3, %vm3121_vm9 }
 0x2c1   :  { %v1174_v33 = vsel %vm1173_vm0, %v1152_v14, %v1158_v21  ;;  %v1175_v41 = vsel %vm1173_vm0, %v1153_v20, %v1162_v22  ;;  %vm1291_vm13 = vmand %vm1289_vm5, %vm1290_vm14  ;;  %vm1384_vm12 = vcmp.eq.s32.totalorder %v1371_v28, %v1377_v31  ;;  %vm1383_vm15 = vcmp.gt.s32.totalorder %v1371_v28, %v1377_v31 }
 0x2c2   :  { %1177 = vst [vmem:[#allocation11] sm:$0xff] %v1174_v33  ;;  %vm1292_vm10 = vmor %vm1288_vm1, %vm1291_vm13  ;;  %vm1385_vm4 = vcmp.lt.s32.totalorder %v1372_v30, %v1381_v32  ;;  %vm3129_vm0 = vnez %v3128_v29  ;;  %vm3130_vm13 = vcmp.gt.s32.totalorder %v2513_v17, %v2620_v62 }
 0x2c3   :  { %1178 = vst [vmem:[#allocation13 + $0x18] sm:$0xff] %v1175_v41  ;;  %vm1297_vm7 = vmxor %vm1292_vm10, %vm3124_vm6 }
 0x2c4   :  { %v1298_v42 = vsel %vm1297_vm7, %v1270_v23, %v1282_v25  ;;  %v1299_v3 = vsel %vm1297_vm7, %v1271_v24, %v1286_v26  ;;  %vm1386_vm11 = vmand %vm1384_vm12, %vm1385_vm4 }
 0x2c5   :  { %v1304_v11 = vperm.slane %v1298_v42, %v2605_v56  ;;  %v1308_v6 = vperm.slane %v1299_v3, %v2605_v56  ;;  %vm1387_vm8 = vmor %vm1383_vm15, %vm1386_vm11 }
 0x2c6   :  { %vm1392_vm5 = vmxor %vm1387_vm8, %vm3122_vm2 }
 0x2c7   :  { %vm1310_vm14 = vcmp.gt.s32.totalorder %v1298_v42, %v1304_v11  ;;  %vm1311_vm3 = vcmp.eq.s32.totalorder %v1298_v42, %v1304_v11  ;;  %vm1312_vm1 = vcmp.lt.s32.totalorder %v1299_v3, %v1308_v6  ;;  %v1393_v43 = vsel %vm1392_vm5, %v1371_v28, %v1377_v31  ;;  %vm1506_vm10 = vmor %vm3130_vm13, %vm3129_vm0 }
 0x2c8   :  { %vm1313_vm7 = vmand %vm1311_vm3, %vm1312_vm1  ;;  %v1394_v44 = vsel %vm1392_vm5, %v1372_v30, %v1381_v32  ;;  %v1399_v45 = vperm.slane %v1393_v43, %v2640_v9  ;;  %v1507_v8 = vsel %vm1506_vm10, %v2513_v17, %v2620_v62  ;;  %v2831_v4 = vsel %vm1506_vm10, %v2620_v62, %v2513_v17 }
 0x2c9   :  { %vm1314_vm4 = vmor %vm1310_vm14, %vm1313_vm7  ;;  %v1403_v15 = vperm.slane %v1394_v44, %v2640_v9  ;;  %v1511_v16 = vsel %vm1506_vm10, %v2515_v18, %v2626_v63  ;;  %v2838_v27 = vsel %vm1506_vm10, %v2626_v63, %v2515_v18  ;;  %vm3131_vm5 = vcmp.lt.s32.totalorder %v2687_v38, %v2709_v19 }
 0x2ca   :  { %vm1319_vm12 = vmxor %vm1314_vm4, %vm3122_vm2  ;;  %vm1405_vm15 = vcmp.gt.s32.totalorder %v1393_v43, %v1399_v45  ;;  %vm1406_vm11 = vcmp.eq.s32.totalorder %v1393_v43, %v1399_v45  ;;  %vm3132_vm14 = vcmp.eq.s32.totalorder %v2681_v36, %v2703_v12 }
 0x2cb   :  { %v1320_v34 = vsel %vm1319_vm12, %v1298_v42, %v1304_v11  ;;  %v1321_v35 = vsel %vm1319_vm12, %v1299_v3, %v1308_v6  ;;  %vm1407_vm8 = vcmp.lt.s32.totalorder %v1394_v44, %v1403_v15  ;;  %vm2848_vm3 = vmand %vm3132_vm14, %vm3131_vm5 }
 0x2cc   :  { %v1326_v18 = vperm.slane %v1320_v34, %v2640_v9  ;;  %v1330_v62 = vperm.slane %v1321_v35, %v2640_v9  ;;  %vm1408_vm1 = vmand %vm1406_vm11, %vm1407_vm8  ;;  %vm3135_vm8 = vcmp.gt.s32.totalorder %v2681_v36, %v2703_v12 }
 0x2cd   :  { %vm1409_vm0 = vmor %vm1405_vm15, %vm1408_vm1 }
 0x2ce   :  { %vm1332_vm13 = vcmp.gt.s32.totalorder %v1320_v34, %v1326_v18  ;;  %vm1333_vm10 = vcmp.eq.s32.totalorder %v1320_v34, %v1326_v18  ;;  %vm1334_vm7 = vcmp.lt.s32.totalorder %v1321_v35, %v1330_v62  ;;  %vm1414_vm4 = vmxor %vm1409_vm0, %vm3121_vm9 }
 0x2cf   :  { %vm1335_vm12 = vmand %vm1333_vm10, %vm1334_vm7  ;;  %v1415_v63 = vsel %vm1414_vm4, %v1393_v43, %v1399_v45  ;;  %v1416_v37 = vsel %vm1414_vm4, %v1394_v44, %v1403_v15 }
 0x2d0   :  { %vm1336_vm2 = vmor %vm1332_vm13, %vm1335_vm12  ;;  %v1427_v39 = vperm.slane %v1415_v63, %v2569_v40  ;;  %v1431_v46 = vperm.slane %v1416_v37, %v2569_v40 }
 0x2d1   :  { %vm1341_vm5 = vmxor %vm1336_vm2, %vm3121_vm9 }
 0x2d2   :  { %v1342_v47 = vsel %vm1341_vm5, %v1320_v34, %v1326_v18  ;;  %v1343_v48 = vsel %vm1341_vm5, %v1321_v35, %v1330_v62  ;;  %vm1433_vm15 = vcmp.gt.s32.totalorder %v1415_v63, %v1427_v39  ;;  %vm1434_vm11 = vcmp.eq.s32.totalorder %v1415_v63, %v1427_v39  ;;  %vm1530_vm14 = vmor %vm3135_vm8, %vm2848_vm3 }
 0x2d3   :  { %1345 = vst [vmem:[#allocation11 + $0x18] sm:$0xff] %v1342_v47  ;;  %vm1435_vm1 = vcmp.lt.s32.totalorder %v1416_v37, %v1431_v46  ;;  %v1532_v49 = vsel %vm1530_vm14, %v2681_v36, %v2703_v12  ;;  %v1535_v50 = vsel %vm1530_vm14, %v2703_v12, %v2681_v36  ;;  %v1538_v51 = vsel %vm1530_vm14, %v2687_v38, %v2709_v19 }
 0x2d4   :  { %1346 = vst [vmem:[#allocation13 + $0x8] sm:$0xff] %v1343_v48  ;;  %vm1436_vm2 = vmand %vm1434_vm11, %vm1435_vm1  ;;  %v1541_v52 = vsel %vm1530_vm14, %v2709_v19, %v2687_v38  ;;  %vm1553_vm0 = vcmp.gt.s32.totalorder %v1507_v8, %v1532_v49  ;;  %vm1554_vm13 = vcmp.eq.s32.totalorder %v1507_v8, %v1532_v49  ;;  %vm1555_vm10 = vcmp.lt.s32.totalorder %v1511_v16, %v1538_v51 }
 0x2d5   :  { %vm1437_vm3 = vmor %vm1433_vm15, %vm1436_vm2  ;;  %vm1866_vm7 = vcmp.gt.s32.totalorder %v2831_v4, %v1535_v50  ;;  %vm1867_vm4 = vcmp.eq.s32.totalorder %v2831_v4, %v1535_v50  ;;  %vm1868_vm12 = vcmp.lt.s32.totalorder %v2838_v27, %v1541_v52 }
 0x2d6   :  { %vm1442_vm5 = vmxor %vm1437_vm3, %vm3124_vm6 }
 0x2d7   :  { %v1443_v36 = vsel %vm1442_vm5, %v1415_v63, %v1427_v39  ;;  %v1444_v12 = vsel %vm1442_vm5, %v1416_v37, %v1431_v46  ;;  %vm1556_vm8 = vmand %vm1554_vm13, %vm1555_vm10 }
 0x2d8   :  { %v1449_v54 = vperm.slane %v1443_v36, %v2605_v56  ;;  %v1453_v38 = vperm.slane %v1444_v12, %v2605_v56  ;;  %vm1557_vm11 = vmor %vm1553_vm0, %vm1556_vm8 }
 0x2d9   :  { %v1558_v19 = vsel %vm1557_vm11, %v1507_v8, %v1532_v49  ;;  %v2880_v55 = vsel %vm1557_vm11, %v1532_v49, %v1507_v8  ;;  %v1562_v57 = vsel %vm1557_vm11, %v1511_v16, %v1538_v51  ;;  %v2882_v58 = vsel %vm1557_vm11, %v1538_v51, %v1511_v16  ;;  %vm1869_vm15 = vmand %vm1867_vm4, %vm1868_vm12 }
 0x2da   :  { %vm1455_vm14 = vcmp.gt.s32.totalorder %v1443_v36, %v1449_v54  ;;  %vm1456_vm1 = vcmp.eq.s32.totalorder %v1443_v36, %v1449_v54  ;;  %vm1457_vm2 = vcmp.lt.s32.totalorder %v1444_v12, %v1453_v38  ;;  %v1574_v59 = vperm.slane %v1558_v19, %v2569_v40  ;;  %vm2887_vm13 = vmor %vm1866_vm7, %vm1869_vm15 }
 0x2db   :  { %vm1458_vm10 = vmand %vm1456_vm1, %vm1457_vm2  ;;  %v1578_v61 = vperm.slane %v1562_v57, %v2569_v40  ;;  %v1719_v0 = vperm.slane %v2880_v55, %v2569_v40  ;;  %v1723_v1 = vperm.slane %v2882_v58, %v2569_v40  ;;  %v2899_v2 = vsel %vm2887_vm13, %v2831_v4, %v1535_v50 }
 0x2dc   :  { %vm1459_vm0 = vmor %vm1455_vm14, %vm1458_vm10  ;;  %vm1580_vm3 = vcmp.gt.s32.totalorder %v1558_v19, %v1574_v59  ;;  %vm1581_vm7 = vcmp.eq.s32.totalorder %v1558_v19, %v1574_v59  ;;  %v2904_v7 = vsel %vm2887_vm13, %v1535_v50, %v2831_v4  ;;  %v2909_v13 = vsel %vm2887_vm13, %v2838_v27, %v1541_v52 }
 0x2dd   :  { %vm3138_vm4 = vnez %v3108_v5  ;;  %vm1582_vm5 = vcmp.lt.s32.totalorder %v1562_v57, %v1578_v61  ;;  %vm1726_vm8 = vcmp.eq.s32.totalorder %v2880_v55, %v1719_v0  ;;  %vm1727_vm15 = vcmp.lt.s32.totalorder %v2882_v58, %v1723_v1 }
 0x2de   :  { %vm1464_vm12 = vmxor %vm1459_vm0, %vm3138_vm4  ;;  %v2918_v21 = vsel %vm2887_vm13, %v1541_v52, %v2838_v27  ;;  %vm1725_vm13 = vcmp.gt.s32.totalorder %v2880_v55, %v1719_v0  ;;  %v1887_v30 = vperm.slane %v2899_v2, %v2569_v40  ;;  %v1891_v31 = vperm.slane %v2909_v13, %v2569_v40 }
 0x2df   :  { %v1465_v14 = vsel %vm1464_vm12, %v1443_v36, %v1449_v54  ;;  %v1466_v20 = vsel %vm1464_vm12, %v1444_v12, %v1453_v38  ;;  %vm1583_vm11 = vmand %vm1581_vm7, %vm1582_vm5  ;;  %v2982_v51 = vperm.slane %v2904_v7, %v2569_v40  ;;  %v2986_v52 = vperm.slane %v2918_v21, %v2569_v40 }
 0x2e0   :  { %v1471_v22 = vperm.slane %v1465_v14, %v2640_v9  ;;  %v1475_v23 = vperm.slane %v1466_v20, %v2640_v9  ;;  %vm1584_vm14 = vmor %vm1580_vm3, %vm1583_vm11 }
 0x2e1   :  { %vm1589_vm1 = vmxor %vm1584_vm14, %vm3124_vm6 }
 0x2e2   :  { %vm1477_vm2 = vcmp.gt.s32.totalorder %v1465_v14, %v1471_v22  ;;  %vm1478_vm10 = vcmp.eq.s32.totalorder %v1465_v14, %v1471_v22  ;;  %vm1479_vm0 = vcmp.lt.s32.totalorder %v1466_v20, %v1475_v23  ;;  %v1590_v24 = vsel %vm1589_vm1, %v1558_v19, %v1574_v59  ;;  %vm2924_vm7 = vmand %vm1726_vm8, %vm1727_vm15 }
 0x2e3   :  { %vm1480_vm12 = vmand %vm1478_vm10, %vm1479_vm0  ;;  %v1591_v26 = vsel %vm1589_vm1, %v1562_v57, %v1578_v61  ;;  %v1596_v28 = vperm.slane %v1590_v24, %v2605_v56  ;;  %vm1894_vm10 = vcmp.eq.s32.totalorder %v2899_v2, %v1887_v30  ;;  %vm1895_vm0 = vcmp.lt.s32.totalorder %v2909_v13, %v1891_v31 }
 0x2e4   :  { %vm1481_vm5 = vmor %vm1477_vm2, %vm1480_vm12  ;;  %v1600_v29 = vperm.slane %v1591_v26, %v2605_v56 }
 0x2e5   :  { %vm1486_vm3 = vmxor %vm1481_vm5, %vm3121_vm9  ;;  %vm1602_vm8 = vcmp.gt.s32.totalorder %v1590_v24, %v1596_v28  ;;  %vm1603_vm11 = vcmp.eq.s32.totalorder %v1590_v24, %v1596_v28  ;;  %vm1893_vm5 = vcmp.gt.s32.totalorder %v2899_v2, %v1887_v30 }
 0x2e6   :  { %v1487_v32 = vsel %vm1486_vm3, %v1465_v14, %v1471_v22  ;;  %v1488_v33 = vsel %vm1486_vm3, %v1466_v20, %v1475_v23  ;;  %vm1604_vm15 = vcmp.lt.s32.totalorder %v1591_v26, %v1600_v29  ;;  %vm2939_vm14 = vmor %vm1725_vm13, %vm2924_vm7 }
 0x2e7   :  { %1490 = vst [vmem:[#allocation11 + $0x8] sm:$0xff] %v1487_v32  ;;  %vm1605_vm1 = vmand %vm1603_vm11, %vm1604_vm15 }
 0x2e8   :  { %1491 = vst [vmem:[#allocation13 + $0x10] sm:$0xff] %v1488_v33  ;;  %vm1606_vm2 = vmor %vm1602_vm8, %vm1605_vm1 }
 0x2e9   :  { %vm1611_vm12 = vmxor %vm1606_vm2, %vm3138_vm4 }
 0x2ea   :  { %v1612_v42 = vsel %vm1611_vm12, %v1590_v24, %v1596_v28  ;;  %v1613_v3 = vsel %vm1611_vm12, %v1591_v26, %v1600_v29  ;;  %vm1734_vm7 = vmxor %vm2939_vm14, %vm3124_vm6 }
 0x2eb   :  { %v1618_v11 = vperm.slane %v1612_v42, %v2640_v9  ;;  %v1622_v6 = vperm.slane %v1613_v3, %v2640_v9  ;;  %v1735_v43 = vsel %vm1734_vm7, %v2880_v55, %v1719_v0  ;;  %v1736_v44 = vsel %vm1734_vm7, %v2882_v58, %v1723_v1  ;;  %vm1896_vm13 = vmand %vm1894_vm10, %vm1895_vm0 }
 0x2ec   :  { %v1741_v45 = vperm.slane %v1735_v43, %v2605_v56  ;;  %v1745_v8 = vperm.slane %v1736_v44, %v2605_v56  ;;  %vm1897_vm3 = vmor %vm1893_vm5, %vm1896_vm13  ;;  %vm3143_vm10 = vnez %v3114_v10 }
 0x2ed   :  { %vm1624_vm8 = vcmp.gt.s32.totalorder %v1612_v42, %v1618_v11  ;;  %vm1625_vm11 = vcmp.eq.s32.totalorder %v1612_v42, %v1618_v11  ;;  %vm1626_vm15 = vcmp.lt.s32.totalorder %v1613_v3, %v1622_v6  ;;  %vm1902_vm14 = vmxor %vm1897_vm3, %vm3124_vm6 }
 0x2ee   :  { %vm1627_vm1 = vmand %vm1625_vm11, %vm1626_vm15  ;;  %vm1748_vm2 = vcmp.eq.s32.totalorder %v1735_v43, %v1741_v45  ;;  %vm1749_vm12 = vcmp.lt.s32.totalorder %v1736_v44, %v1745_v8  ;;  %v1903_v4 = vsel %vm1902_vm14, %v2899_v2, %v1887_v30  ;;  %vm1747_vm9 = vcmp.gt.s32.totalorder %v1735_v43, %v1741_v45 }
 0x2ef   :  { %vm1628_vm4 = vmor %vm1624_vm8, %vm1627_vm1  ;;  %v1904_v15 = vsel %vm1902_vm14, %v2909_v13, %v1891_v31  ;;  %v1909_v16 = vperm.slane %v1903_v4, %v2605_v56  ;;  %vm3144_vm8 = vnez %v3108_v5 }
 0x2f0   :  { %vm1633_vm0 = vmxor %vm1628_vm4, %vm3143_vm10  ;;  %v1913_v27 = vperm.slane %v1904_v15, %v2605_v56 }
 0x2f1   :  { %v1634_v34 = vsel %vm1633_vm0, %v1612_v42, %v1618_v11  ;;  %v1635_v35 = vsel %vm1633_vm0, %v1613_v3, %v1622_v6  ;;  %vm1750_vm5 = vmand %vm1748_vm2, %vm1749_vm12  ;;  %vm1916_vm7 = vcmp.eq.s32.totalorder %v1903_v4, %v1909_v16  ;;  %vm1915_vm2 = vcmp.gt.s32.totalorder %v1903_v4, %v1909_v16 }
 0x2f2   :  { %v1646_v17 = vperm.slane %v1634_v34, %v2569_v40  ;;  %v1650_v18 = vperm.slane %v1635_v35, %v2569_v40  ;;  %vm1751_vm13 = vmor %vm1747_vm9, %vm1750_vm5  ;;  %vm1917_vm3 = vcmp.lt.s32.totalorder %v1904_v15, %v1913_v27 }
 0x2f3   :  { %vm1756_vm11 = vmxor %vm1751_vm13, %vm3144_vm8 }
 0x2f4   :  { %vm1652_vm15 = vcmp.gt.s32.totalorder %v1634_v34, %v1646_v17  ;;  %vm1653_vm14 = vcmp.eq.s32.totalorder %v1634_v34, %v1646_v17  ;;  %vm1654_vm1 = vcmp.lt.s32.totalorder %v1635_v35, %v1650_v18  ;;  %v1757_v62 = vsel %vm1756_vm11, %v1735_v43, %v1741_v45  ;;  %vm1918_vm4 = vmand %vm1916_vm7, %vm1917_vm3 }
 0x2f5   :  { %vm1655_vm10 = vmand %vm1653_vm14, %vm1654_vm1  ;;  %v1758_v63 = vsel %vm1756_vm11, %v1736_v44, %v1745_v8  ;;  %v1763_v37 = vperm.slane %v1757_v62, %v2640_v9  ;;  %vm3147_vm14 = vnez %v3114_v10 }
 0x2f6   :  { %vm1656_vm12 = vmor %vm1652_vm15, %vm1655_vm10  ;;  %v1767_v39 = vperm.slane %v1758_v63, %v2640_v9 }
 0x2f7   :  { %vm1661_vm9 = vmxor %vm1656_vm12, %vm3124_vm6  ;;  %vm1769_vm0 = vcmp.gt.s32.totalorder %v1757_v62, %v1763_v37  ;;  %vm1770_vm5 = vcmp.eq.s32.totalorder %v1757_v62, %v1763_v37  ;;  %vm2039_vm12 = vcmp.eq.s32.totalorder %v2904_v7, %v2982_v51 }
 0x2f8   :  { %v1662_v46 = vsel %vm1661_vm9, %v1634_v34, %v1646_v17  ;;  %v1663_v47 = vsel %vm1661_vm9, %v1635_v35, %v1650_v18  ;;  %vm1771_vm13 = vcmp.lt.s32.totalorder %v1758_v63, %v1767_v39  ;;  %vm2974_vm8 = vmor %vm1915_vm2, %vm1918_vm4  ;;  %vm2040_vm9 = vcmp.lt.s32.totalorder %v2918_v21, %v2986_v52 }
 0x2f9   :  { %v1668_v49 = vperm.slane %v1662_v46, %v2605_v56  ;;  %v1672_v50 = vperm.slane %v1663_v47, %v2605_v56  ;;  %vm1772_vm7 = vmand %vm1770_vm5, %vm1771_vm13 }
 0x2fa   :  { %vm1773_vm10 = vmor %vm1769_vm0, %vm1772_vm7  ;;  %vm3148_vm0 = vnez %v3108_v5 }
 0x2fb   :  { %vm1674_vm3 = vcmp.gt.s32.totalorder %v1662_v46, %v1668_v49  ;;  %vm1675_vm11 = vcmp.eq.s32.totalorder %v1662_v46, %v1668_v49  ;;  %vm1676_vm15 = vcmp.lt.s32.totalorder %v1663_v47, %v1672_v50  ;;  %vm1778_vm1 = vmxor %vm1773_vm10, %vm3147_vm14 }
 0x2fc   :  { %vm1677_vm4 = vmand %vm1675_vm11, %vm1676_vm15  ;;  %v1779_v36 = vsel %vm1778_vm1, %v1757_v62, %v1763_v37  ;;  %v1780_v12 = vsel %vm1778_vm1, %v1758_v63, %v1767_v39 }
 0x2fd   :  { %vm1678_vm2 = vmor %vm1674_vm3, %vm1677_vm4  ;;  %v1791_v54 = vperm.slane %v1779_v36, %v2569_v40  ;;  %v1795_v38 = vperm.slane %v1780_v12, %v2569_v40 }
 0x2fe   :  { %vm1683_vm5 = vmxor %vm1678_vm2, %vm3148_vm0 }
 0x2ff   :  { %v1684_v19 = vsel %vm1683_vm5, %v1662_v46, %v1668_v49  ;;  %v1685_v55 = vsel %vm1683_vm5, %v1663_v47, %v1672_v50  ;;  %vm1797_vm13 = vcmp.gt.s32.totalorder %v1779_v36, %v1791_v54  ;;  %vm1798_vm7 = vcmp.eq.s32.totalorder %v1779_v36, %v1791_v54  ;;  %vm1924_vm10 = vmxor %vm2974_vm8, %vm3148_vm0 }
 0x300   :  { %v1690_v57 = vperm.slane %v1684_v19, %v2640_v9  ;;  %v1694_v58 = vperm.slane %v1685_v55, %v2640_v9  ;;  %vm1799_vm3 = vcmp.lt.s32.totalorder %v1780_v12, %v1795_v38  ;;  %v1925_v59 = vsel %vm1924_vm10, %v1903_v4, %v1909_v16  ;;  %vm3004_vm11 = vmand %vm2039_vm12, %vm2040_vm9 }
 0x301   :  { %v3150_v60 = vsel %vm3004_vm11, 4294967295, %v3149_v60  ;;  %vm1800_vm15 = vmand %vm1798_vm7, %vm1799_vm3  ;;  %v1926_v61 = vsel %vm1924_vm10, %v1904_v15, %v1913_v27  ;;  %v1931_v0 = vperm.slane %v1925_v59, %v2640_v9  ;;  %vm3151_vm9 = vnez %v3114_v10 }
 0x302   :  { %vm1696_vm1 = vcmp.gt.s32.totalorder %v1684_v19, %v1690_v57  ;;  %vm1697_vm4 = vcmp.eq.s32.totalorder %v1684_v19, %v1690_v57  ;;  %vm1698_vm2 = vcmp.lt.s32.totalorder %v1685_v55, %v1694_v58  ;;  %vm1801_vm5 = vmor %vm1797_vm13, %vm1800_vm15  ;;  %v1935_v1 = vperm.slane %v1926_v61, %v2640_v9 }
 0x303   :  { %vm1699_vm8 = vmand %vm1697_vm4, %vm1698_vm2  ;;  %vm1938_vm6 = vcmp.eq.s32.totalorder %v1925_v59, %v1931_v0  ;;  %vm1937_vm11 = vcmp.gt.s32.totalorder %v1925_v59, %v1931_v0  ;;  %vm3152_vm7 = vnez %v3106_v53  ;;  %vm2038_vm13 = vcmp.gt.s32.totalorder %v2904_v7, %v2982_v51 }
 0x304   :  { %vm1700_vm0 = vmor %vm1696_vm1, %vm1699_vm8  ;;  %vm1939_vm14 = vcmp.lt.s32.totalorder %v1926_v61, %v1935_v1 }
 0x305   :  { %vm1705_vm12 = vmxor %vm1700_vm0, %vm3151_vm9 }
 0x306   :  { %v1706_v2 = vsel %vm1705_vm12, %v1684_v19, %v1690_v57  ;;  %v1707_v13 = vsel %vm1705_vm12, %v1685_v55, %v1694_v58  ;;  %vm1806_vm10 = vmxor %vm1801_vm5, %vm3152_vm7  ;;  %vm3153_vm5 = vnez %v3150_v60  ;;  %v2182_v19 = vld [vmem:[#allocation11 + $0x18] sm:$0xff]  ;;  %v2188_v55 = vld [vmem:[#allocation11 + $0x8] sm:$0xff] }
 0x307   :  { %1709 = vst [vmem:[#allocation12] sm:$0xff] %v1706_v2  ;;  %v1807_v14 = vsel %vm1806_vm10, %v1779_v36, %v1791_v54  ;;  %v1808_v20 = vsel %vm1806_vm10, %v1780_v12, %v1795_v38  ;;  %vm1940_vm3 = vmand %vm1938_vm6, %vm1939_vm14  ;;  %v2170_v12 = vld [vmem:[#allocation11 + $0x10] sm:$0xff]  ;;  %v2176_v38 = vld [vmem:[#allocation11] sm:$0xff]  ;;  %v2184_v58 = vsub.s32 2147483647, %v2182_v19 }
 0x308   :  { %1710 = vst [vmem:[#allocation14] sm:$0xff] %v1707_v13  ;;  %v1813_v22 = vperm.slane %v1807_v14, %v2605_v56  ;;  %v1817_v23 = vperm.slane %v1808_v20, %v2605_v56  ;;  %vm1941_vm15 = vmor %vm1937_vm11, %vm1940_vm3  ;;  %vm3156_vm11 = vnez %v3108_v5  ;;  %v2172_v54 = vsub.s32 2147483647, %v2170_v12  ;;  %v2227_v2 = vld [vmem:[#allocation13 + $0x10] sm:$0xff] }
 0x309   :  { %vm1946_vm0 = vmxor %vm1941_vm15, %vm3151_vm9 }
 0x30a   :  { %vm1819_vm1 = vcmp.gt.s32.totalorder %v1807_v14, %v1813_v22  ;;  %vm1820_vm4 = vcmp.eq.s32.totalorder %v1807_v14, %v1813_v22  ;;  %vm1821_vm2 = vcmp.lt.s32.totalorder %v1808_v20, %v1817_v23  ;;  %v1947_v24 = vsel %vm1946_vm0, %v1925_v59, %v1931_v0  ;;  %vm3022_vm8 = vmor %vm2038_vm13, %vm3153_vm5 }
 0x30b   :  { %vm1822_vm6 = vmand %vm1820_vm4, %vm1821_vm2  ;;  %v1948_v26 = vsel %vm1946_vm0, %v1926_v61, %v1935_v1  ;;  %v1959_v28 = vperm.slane %v1947_v24, %v2569_v40  ;;  %v2190_v59 = vsub.s32 2147483647, %v2188_v55  ;;  %v2223_v61 = vld [vmem:[#allocation13 + $0x18] sm:$0xff]  ;;  %v2225_v1 = vld [vmem:[#allocation13 + $0x8] sm:$0xff] }
 0x30c   :  { %vm1823_vm14 = vmor %vm1819_vm1, %vm1822_vm6  ;;  %v1963_v29 = vperm.slane %v1948_v26, %v2569_v40 }
 0x30d   :  { %vm1828_vm12 = vmxor %vm1823_vm14, %vm3156_vm11  ;;  %vm1965_vm10 = vcmp.gt.s32.totalorder %v1947_v24, %v1959_v28  ;;  %vm1966_vm3 = vcmp.eq.s32.totalorder %v1947_v24, %v1959_v28 }
 0x30e   :  { %v1829_v30 = vsel %vm1828_vm12, %v1807_v14, %v1813_v22  ;;  %v1830_v31 = vsel %vm1828_vm12, %v1808_v20, %v1817_v23  ;;  %vm1967_vm15 = vcmp.lt.s32.totalorder %v1948_v26, %v1963_v29  ;;  %vm2047_vm13 = vmxor %vm3022_vm8, %vm3152_vm7 }
 0x30f   :  { %v1835_v32 = vperm.slane %v1829_v30, %v2640_v9  ;;  %v1839_v33 = vperm.slane %v1830_v31, %v2640_v9  ;;  %vm1968_vm0 = vmand %vm1966_vm3, %vm1967_vm15  ;;  %v2048_v41 = vsel %vm2047_vm13, %v2904_v7, %v2982_v51  ;;  %v2049_v42 = vsel %vm2047_vm13, %v2918_v21, %v2986_v52 }
 0x310   :  { %vm1969_vm1 = vmor %vm1965_vm10, %vm1968_vm0  ;;  %v2054_v3 = vperm.slane %v2048_v41, %v2605_v56  ;;  %v2058_v11 = vperm.slane %v2049_v42, %v2605_v56 }
 0x311   :  { %vm1841_vm4 = vcmp.gt.s32.totalorder %v1829_v30, %v1835_v32  ;;  %vm1842_vm2 = vcmp.eq.s32.totalorder %v1829_v30, %v1835_v32  ;;  %vm1843_vm5 = vcmp.lt.s32.totalorder %v1830_v31, %v1839_v33  ;;  %vm1974_vm8 = vmxor %vm1969_vm1, %vm3152_vm7 }
 0x312   :  { %vm1844_vm6 = vmand %vm1842_vm2, %vm1843_vm5  ;;  %v1975_v6 = vsel %vm1974_vm8, %v1947_v24, %v1959_v28  ;;  %v1976_v43 = vsel %vm1974_vm8, %v1948_v26, %v1963_v29  ;;  %vm2061_vm14 = vcmp.eq.s32.totalorder %v2048_v41, %v2054_v3  ;;  %vm2060_vm10 = vcmp.gt.s32.totalorder %v2048_v41, %v2054_v3 }
 0x313   :  { %vm1845_vm12 = vmor %vm1841_vm4, %vm1844_vm6  ;;  %v1981_v7 = vperm.slane %v1975_v6, %v2605_v56  ;;  %v1985_v21 = vperm.slane %v1976_v43, %v2605_v56  ;;  %vm2062_vm3 = vcmp.lt.s32.totalorder %v2049_v42, %v2058_v11  ;;  %vm3157_vm8 = vnez %v3108_v5  ;;  %v2221_v5 = vld [vmem:[#allocation13] sm:$0xff] }
 0x314   :  { %vm1850_vm15 = vmxor %vm1845_vm12, %vm3151_vm9  ;;  %2228 = vxpose.xlu1.b32.start [1/4] (short) (narrow) %v2221_v5, 8 }
 0x315   :  { %v1851_v44 = vsel %vm1850_vm15, %v1829_v30, %v1835_v32  ;;  %v1852_v45 = vsel %vm1850_vm15, %v1830_v31, %v1839_v33  ;;  %vm1987_vm13 = vcmp.gt.s32.totalorder %v1975_v6, %v1981_v7  ;;  %vm1988_vm0 = vcmp.eq.s32.totalorder %v1975_v6, %v1981_v7  ;;  %vm2063_vm11 = vmand %vm2061_vm14, %vm2062_vm3 }
 0x316   :  { %1854 = vst [vmem:[#allocation12 + $0x8] sm:$0xff] %v1851_v44  ;;  %vm1989_vm1 = vcmp.lt.s32.totalorder %v1976_v43, %v1985_v21  ;;  %vm2064_vm2 = vmor %vm2060_vm10, %vm2063_vm11 }
 0x317   :  { %1855 = vst [vmem:[#allocation14 + $0x8] sm:$0xff] %v1852_v45  ;;  %vm1990_vm5 = vmand %vm1988_vm0, %vm1989_vm1 }
 0x318   :  { %vm1991_vm4 = vmor %vm1987_vm13, %vm1990_vm5 }
 0x319   :  { %vm1996_vm6 = vmxor %vm1991_vm4, %vm3157_vm8 }
 0x31a   :  { %v1997_v8 = vsel %vm1996_vm6, %v1975_v6, %v1981_v7  ;;  %v1998_v4 = vsel %vm1996_vm6, %v1976_v43, %v1985_v21  ;;  %vm2069_vm7 = vmxor %vm2064_vm2, %vm3157_vm8 }
 0x31b   :  { %v2003_v15 = vperm.slane %v1997_v8, %v2640_v9  ;;  %v2007_v16 = vperm.slane %v1998_v4, %v2640_v9  ;;  %v2070_v27 = vsel %vm2069_vm7, %v2048_v41, %v2054_v3  ;;  %v2071_v34 = vsel %vm2069_vm7, %v2049_v42, %v2058_v11 }
 0x31c   :  { %v2076_v35 = vperm.slane %v2070_v27, %v2640_v9  ;;  %v2080_v17 = vperm.slane %v2071_v34, %v2640_v9  ;;  %2229 = vxpose.xlu1.b32.cont [2/4] (short) (narrow) %v2223_v61, 8 }
 0x31d   :  { %vm2009_vm11 = vcmp.gt.s32.totalorder %v1997_v8, %v2003_v15  ;;  %vm2010_vm14 = vcmp.eq.s32.totalorder %v1997_v8, %v2003_v15  ;;  %vm2011_vm12 = vcmp.lt.s32.totalorder %v1998_v4, %v2007_v16 }
 0x31e   :  { %vm2012_vm10 = vmand %vm2010_vm14, %vm2011_vm12  ;;  %vm2083_vm3 = vcmp.eq.s32.totalorder %v2070_v27, %v2076_v35  ;;  %vm2084_vm15 = vcmp.lt.s32.totalorder %v2071_v34, %v2080_v17  ;;  %vm2082_vm0 = vcmp.gt.s32.totalorder %v2070_v27, %v2076_v35 }
 0x31f   :  { %vm2013_vm13 = vmor %vm2009_vm11, %vm2012_vm10  ;;  %vm3158_vm10 = vnez %v3106_v53 }
 0x320   :  { %vm2018_vm1 = vmxor %vm2013_vm13, %vm3151_vm9 }
 0x321   :  { %v2019_v18 = vsel %vm2018_vm1, %v1997_v8, %v2003_v15  ;;  %v2020_v62 = vsel %vm2018_vm1, %v1998_v4, %v2007_v16  ;;  %vm2085_vm2 = vmand %vm2083_vm3, %vm2084_vm15 }
 0x322   :  { %2022 = vst [vmem:[#allocation12 + $0x10] sm:$0xff] %v2019_v18  ;;  %vm2086_vm7 = vmor %vm2082_vm0, %vm2085_vm2 }
 0x323   :  { %2023 = vst [vmem:[#allocation14 + $0x10] sm:$0xff] %v2020_v62  ;;  %vm2091_vm5 = vmxor %vm2086_vm7, %vm3151_vm9 }
 0x324   :  { %v2092_v63 = vsel %vm2091_vm5, %v2070_v27, %v2076_v35  ;;  %v2093_v37 = vsel %vm2091_vm5, %v2071_v34, %v2080_v17  ;;  %2230 = vxpose.xlu1.b32.cont [3/4] (short) (narrow) %v2225_v1, 8 }
 0x325   :  { %v2104_v39 = vperm.slane %v2092_v63, %v2569_v40  ;;  %v2108_v46 = vperm.slane %v2093_v37, %v2569_v40 }
 0x327   :  { %vm2110_vm4 = vcmp.gt.s32.totalorder %v2092_v63, %v2104_v39  ;;  %vm2111_vm6 = vcmp.eq.s32.totalorder %v2092_v63, %v2104_v39  ;;  %vm2112_vm11 = vcmp.lt.s32.totalorder %v2093_v37, %v2108_v46 }
 0x328   :  { %vm2113_vm14 = vmand %vm2111_vm6, %vm2112_vm11 }
 0x329   :  { %vm2114_vm12 = vmor %vm2110_vm4, %vm2113_vm14 }
 0x32a   :  { %vm2119_vm3 = vmxor %vm2114_vm12, %vm3158_vm10  ;;  %vm2177_vm10 = vcmp.lt.s32.totalorder %v2176_v38, 0 }
 0x32b   :  { %v2120_v47 = vsel %vm2119_vm3, %v2092_v63, %v2104_v39  ;;  %v2121_v48 = vsel %vm2119_vm3, %v2093_v37, %v2108_v46  ;;  %vm2183_vm3 = vcmp.lt.s32.totalorder %v2182_v19, 0 }
 0x32c   :  { %v2126_v49 = vperm.slane %v2120_v47, %v2605_v56  ;;  %v2130_v50 = vperm.slane %v2121_v48, %v2605_v56  ;;  %v2185_v60 = vsel %vm2183_vm3, %v2184_v58, %v2182_v19  ;;  %2231 = vxpose.xlu1.b32.end [4/4] (short) (narrow) %v2227_v2, 8 }
 0x32d   :  { %2186 = vst [vmem:[#allocation11 + $0x18] sm:$0xff] %v2185_v60 }
 0x32e   :  { %vm2132_vm15 = vcmp.gt.s32.totalorder %v2120_v47, %v2126_v49  ;;  %vm2133_vm13 = vcmp.eq.s32.totalorder %v2120_v47, %v2126_v49  ;;  %vm2134_vm0 = vcmp.lt.s32.totalorder %v2121_v48, %v2130_v50 }
 0x32f   :  { %vm2135_vm1 = vmand %vm2133_vm13, %vm2134_vm0 }
 0x330   :  { %vm2136_vm2 = vmor %vm2132_vm15, %vm2135_vm1  ;;  %vm2189_vm15 = vcmp.lt.s32.totalorder %v2188_v55, 0 }
 0x331   :  { %vm2141_vm7 = vmxor %vm2136_vm2, %vm3157_vm8  ;;  %vm2171_vm8 = vcmp.lt.s32.totalorder %v2170_v12, 0  ;;  %v2191_v0 = vsel %vm2189_vm15, %v2190_v59, %v2188_v55 }
 0x332   :  { %v2142_v40 = vsel %vm2141_vm7, %v2120_v47, %v2126_v49  ;;  %v2143_v51 = vsel %vm2141_vm7, %v2121_v48, %v2130_v50  ;;  %v2173_v57 = vsel %vm2171_vm8, %v2172_v54, %v2170_v12  ;;  %2192 = vst [vmem:[#allocation11 + $0x8] sm:$0xff] %v2191_v0 }
 0x333   :  { %v2148_v52 = vperm.slane %v2142_v40, %v2640_v9  ;;  %v2152_v53 = vperm.slane %v2143_v51, %v2640_v9  ;;  %v2178_v9 = vsub.s32 2147483647, %v2176_v38  ;;  %2174 = vst [vmem:[#allocation11 + $0x10] sm:$0xff] %v2173_v57  ;;  %2200 = vxpose.xlu0.b32.start [1/4] (short) (narrow) %v2173_v57, 8 }
 0x335   :  { %vm2154_vm5 = vcmp.gt.s32.totalorder %v2142_v40, %v2148_v52  ;;  %vm2155_vm4 = vcmp.eq.s32.totalorder %v2142_v40, %v2148_v52  ;;  %vm2156_vm6 = vcmp.lt.s32.totalorder %v2143_v51, %v2152_v53  ;;  %v2179_v10 = vsel %vm2177_vm10, %v2178_v9, %v2176_v38 }
 0x336   :  { %vm2157_vm11 = vmand %vm2155_vm4, %vm2156_vm6  ;;  %2180 = vst [vmem:[#allocation11] sm:$0xff] %v2179_v10 }
 0x337   :  { %vm2158_vm14 = vmor %vm2154_vm5, %vm2157_vm11 }
 0x338   :  { %vm2163_vm12 = vmxor %vm2158_vm14, %vm3151_vm9 }
 0x339   :  { %v2164_v56 = vsel %vm2163_vm12, %v2142_v40, %v2148_v52  ;;  %v2165_v36 = vsel %vm2163_vm12, %v2143_v51, %v2152_v53 }
 0x33a   :  { %2167 = vst [vmem:[#allocation12 + $0x18] sm:$0xff] %v2164_v56 }
 0x33b   :  { %2168 = vst [vmem:[#allocation14 + $0x18] sm:$0xff] %v2165_v36  ;;  %2201 = vxpose.xlu0.b32.cont [2/4] (short) (narrow) %v2179_v10, 8 }
 0x343   :  { %2202 = vxpose.xlu0.b32.cont [3/4] (short) (narrow) %v2185_v60, 8 }
 0x34b   :  { %2203 = vxpose.xlu0.b32.end [4/4] (short) (narrow) %v2191_v0, 8 }
 0x3b8   :  { %v2232_v13 = vpop.trf.xlu1 }
 0x3b9   :  { %2248 = vst [vmem:[#allocation9] sm:$0xff] %v2232_v13 }
 0x3c0   :  { %v2257_v20 = vld [vmem:[#allocation9] sm:$0x3] }
 0x3c1   :  { %2260 = vst [vmem:[#allocation10] sm:$0x3] %v2257_v20 }
 0x3c8   :  { %v2310_v23 = vld [vmem:[#allocation10] sm:$0x3] }
 0x3c9   :  { %2311 = vst [vmem:[%s3080_s2] sm:$0x3] %v2310_v23 }
 0x3d7   :  { %v2204_v14 = vpop.trf.xlu0 }
 0x3d8   :  { %2220 = vst [vmem:[#allocation7] sm:$0xff] %v2204_v14 }
 0x3df   :  { %v2251_v22 = vld [vmem:[#allocation7] sm:$0x3] }
 0x3e0   :  { %2254 = vst [vmem:[#allocation8] sm:$0x3] %v2251_v22 }
 0x3e7   :  { %v2277_v24 = vld [vmem:[#allocation8] sm:$0x3] }
 0x3e8   :  { %2278 = vst [vmem:[%s3079_s1] sm:$0x3] %v2277_v24 }

// kernel: _lambda_.2
= control target key start
LH: loop header
LB: loop body
LE: loop exit
PB: predicated region body
PF: predicated region fallthrough
CT: control target
= control target key end

     0   :  { %s610_s9 = smov 0   ;;  %s612_s10 = smov 0   ;;  %s709_s0 = inlined_call_operand.vmem [shape: f32[2,2,1,256], index: 0, kind: input, shape index: {}]   ;;  %s710_s1 = inlined_call_operand.vmem [shape: bf16[16,64], index: 1, kind: input, shape index: {}]   ;;  %s711_s2 = inlined_call_operand.vmem [shape: f32[2,16,256], index: 2, kind: output, shape index: {}]  }
   0x1   :  { %s614_s11 = smov 0   ;;  %s616_s12 = smov 0  }
   0x2   :  { %s618_s13 = smov 0   ;;  %s620_s14 = smov 0  }
   0x3   :  { %s622_s15 = smov 0  }
   0x4 LB: > { %s21_s16 = sadd.s32 1, %s577_s13  ;;  %s24_s17 = sadd.s32 1, %s581_s14  ;;  %s585_s15 = sphi %s622_s15, %s12_s15   ;;  %s581_s14 = sphi %s620_s14, %s718_s14   ;;  %s577_s13 = sphi %s618_s13, %s717_s13   ;;  %s573_s12 = sphi %s616_s12, %s716_s12   ;;  %s569_s11 = sphi %s614_s11, %s715_s11   ;;  %s565_s10 = sphi %s612_s10, %s714_s10   ;;  %s561_s9 = sphi %s610_s9, %s713_s9  }
   0x5   : > { %p22_p0 = scmp.ge.s32.totalorder %s21_s16, 2  ;;  %s408_s18 = sadd.s32 4294967295, %s585_s15  }
   0x6   : > { %p92_p1 = scmp.ne.s32.totalorder %s565_s10, %s561_s9  ;;  %p93_p2 = scmp.eq.s32.totalorder %s408_s18, 3 }
   0x7   : > { %s720_s16 = smov (%p22_p0, %s21_s16), 0  ;;  %s722_s17 = smov (!%p22_p0, %s24_s17), %s581_s14 }
   0x8   : > { %s78_s19 = ssub.s32 %s577_s13, %s720_s16  ;;  %p26_p3 = scmp.ge.s32.totalorder %s722_s17, 2 }
   0x9   : > { %p412_p4 = scmp.ge.s32.totalorder %s585_s15, 1  ;;  %p656_p5 = por %p93_p2, %p92_p1 }
   0xa   : > { %p131_p6 = scmp.lt.s32.totalorder %s585_s15, 5  ;;  %s724_s17 = smov (%p26_p3, %s722_s17), 0 }
   0xb   : > { %s77_s21 = ssub.s32 %s581_s14, %s724_s17  ;;  %s82_s23 = sadd.s32 1, %s565_s10 }
   0xc   : > { %p132_p7 = pnand %p412_p4, %p131_p6  ;;  %s79_s22 = sor.u32 %s78_s19, %s77_s21 }
   0xd   : > { %p80_p8 = scmp.eq.s32.totalorder %s79_s22, 0  ;;  %p155_p9 = scmp.lt.s32.totalorder (!%p132_p7), %s573_s12, 1 }
   0xe   : > { %135 = sbr.rel (%p132_p7) target bundleno = 316 (0x13c), region = 28  ;;  %p157_p10 = scmp.lt.s32.totalorder (!%p132_p7), %s569_s11, 1 }
   0xf   : > { %s667_s24 = scalar_select %p80_p8, %s565_s10, %s82_s23  }
  0x10   : > { %s587_s5 = smov (!%p132_p7), 288   ;;  %s588_s6 = smov (!%p132_p7), 304  }
  0x11   : > { %s589_s7 = smov (!%p132_p7), 272   ;;  %s590_s8 = smov (!%p132_p7), 296  }
  0x12   : > { %s591_s18 = smov (!%p132_p7), 312   ;;  %s592_s19 = smov (!%p132_p7), 280  }
  0x13   : > { %s156_s25 = scalar_select %p155_p9, %s573_s12, 1  ;;  %v176_v4 = vlaneseq  ;;  %v426_v50 = vld [vmem:[%s710_s1] sm:$0xff]  ;;  %vm270_vm8 = vcmask 523264  }
  0x14   : > { %s158_s26 = scalar_select %p157_p10, %s569_s11, 1 }
  0x15   : > { %s415_s27 = sshll.u32 %s156_s25, 2  ;;  %s593_s21 = smov 264   ;;  %v177_v8 = vshrl.u32 %v176_v4, 7  ;;  %v179_v9 = vand.u32 127, %v176_v4 }
  0x16   : > { %s414_s28 = sshll.u32 %s158_s26, 1  ;;  %s594_s22 = smov 256  }
  0x17   : > { %s161_s29 = sadd.s32 %s415_s27, %s414_s28  ;;  %v245_v10 = vadd.s32 48, %v177_v8  ;;  %v256_v11 = vadd.s32 56, %v177_v8  ;;  %v223_v12 = vadd.s32 32, %v177_v8  ;;  %v234_v13 = vadd.s32 40, %v177_v8  ;;  %s152_s26 = sand.u32 1, %s561_s9  }
  0x18   : > { %s162_s4 = scalar_lea.vmem %s709_s0, %s161_s29  ;;  %v201_v14 = vadd.s32 16, %v177_v8  ;;  %v212_v19 = vadd.s32 24, %v177_v8  ;;  %v190_v34 = vadd.s32 8, %v177_v8  ;;  %vm180_vm6 = vcmp.lt.s32.totalorder %v179_v9, %v177_v8  ;;  %s413_s27 = sshll.u32 %s152_s26, 4 }
  0x19   : > { %v164_v0 = vld [vmem:[%s162_s4] sm:$0x3]  ;;  %vm246_vm0 = vcmp.lt.s32.totalorder %v179_v9, %v245_v10  ;;  %vm257_vm1 = vcmp.lt.s32.totalorder %v179_v9, %v256_v11  ;;  %vm224_vm2 = vcmp.lt.s32.totalorder %v179_v9, %v223_v12  ;;  %vm235_vm3 = vcmp.lt.s32.totalorder %v179_v9, %v234_v13  ;;  %s154_s28 = scalar_lea.vmem [#allocation2], %s413_s27  ;;  %s422_s29 = sshll.u32 (%p656_p5), %s573_s12, 2 }
  0x1a   : > { %v166_v1 = vperm.slane %v164_v0, 0  ;;  %v167_v2 = vperm.slane %v164_v0, 1  ;;  %vm202_vm4 = vcmp.lt.s32.totalorder %v179_v9, %v201_v14  ;;  %vm213_vm5 = vcmp.lt.s32.totalorder %v179_v9, %v212_v19  ;;  %s298_s30 = sadd.s32 (%p656_p5), %s569_s11, %s422_s29 }
  0x1b   : > { %vm191_vm7 = vcmp.lt.s32.totalorder %v179_v9, %v190_v34  ;;  %s423_s3 = sshll.u32 (%p656_p5), %s298_s30, 3 }
  0x1c   : > { %v501_v3 = vpack.i.bf16 %v167_v2, %v166_v1  ;;  %s300_s9 = scalar_lea.vmem (%p656_p5), %s711_s2, %s423_s3 }
  0x1e   : > { %502 = vrot.lane.b32.xlu1 %v501_v3, %s587_s5  ;;  %492 = vrot.lane.b32.xlu0 %v501_v3, %s588_s6 }
  0x1f   : > { %512 = vrot.lane.b32.xlu2 %v501_v3, %s589_s7 }
  0x26   : > { %507 = vrot.lane.b32.xlu1 %v501_v3, %s590_s8  ;;  %497 = vrot.lane.b32.xlu0 %v501_v3, %s591_s18 }
  0x27   : > { %517 = vrot.lane.b32.xlu2 %v501_v3, %s592_s19 }
  0x2e   : > { %527 = vrot.lane.b32.xlu1 %v501_v3, %s593_s21  ;;  %522 = vrot.lane.b32.xlu0 %v501_v3, %s594_s22 }
  0x79   : > { %v513_v5 = vpop.permute.xlu2 %512 }
  0x7a   : > { %v515_v25 = vunpack.i.h.bf16 %v513_v5  ;;  %v514_v26 = vunpack.i.l.bf16 %v513_v5 }
  0x7c   : > { %v203_v37 = vsel %vm202_vm4, %v514_v26, %v515_v25 }
  0x81   : > { %v518_v20 = vpop.permute.xlu2 %517 }
  0x82   : > { %v520_v31 = vunpack.i.h.bf16 %v518_v20  ;;  %v519_v32 = vunpack.i.l.bf16 %v518_v20 }
  0x84   : > { %v214_v41 = vsel %vm213_vm5, %v519_v32, %v520_v31 }
  0x85   : > { %v260_v48 = vpack.c.bf16 %v214_v41, %v203_v37 }
  0x90   : > { %v503_v6 = vpop.permute.xlu1 %502  ;;  %v493_v7 = vpop.permute.xlu0 %492 }
  0x91   : > { %v495_v15 = vunpack.i.h.bf16 %v493_v7  ;;  %v494_v16 = vunpack.i.l.bf16 %v493_v7  ;;  %v505_v27 = vunpack.i.h.bf16 %v503_v6  ;;  %v504_v28 = vunpack.i.l.bf16 %v503_v6 }
  0x93   : > { %v247_v29 = vsel %vm246_vm0, %v494_v16, %v495_v15  ;;  %v225_v36 = vsel %vm224_vm2, %v504_v28, %v505_v27 }
  0x98   : > { %v508_v17 = vpop.permute.xlu1 %507  ;;  %v498_v18 = vpop.permute.xlu0 %497 }
  0x99   : > { %v510_v21 = vunpack.i.h.bf16 %v508_v17  ;;  %v509_v22 = vunpack.i.l.bf16 %v508_v17  ;;  %v500_v23 = vunpack.i.h.bf16 %v498_v18  ;;  %v499_v24 = vunpack.i.l.bf16 %v498_v18 }
  0x9b   : > { %v258_v30 = vsel %vm257_vm1, %v499_v24, %v500_v23  ;;  %v236_v35 = vsel %vm235_vm3, %v509_v22, %v510_v21 }
  0x9c   : > { %v262_v33 = vpack.c.bf16 %v258_v30, %v247_v29  ;;  %v261_v38 = vpack.c.bf16 %v236_v35, %v225_v36 }
  0x9e   : > { %278 = vmatpush.bf16.msra.mxu0 %v262_v33 }
  0xa0   : > { %v528_v39 = vpop.permute.xlu1 %527  ;;  %v523_v40 = vpop.permute.xlu0 %522 }
  0xa1   : > { %v530_v42 = vunpack.i.h.bf16 %v528_v39  ;;  %v529_v43 = vunpack.i.l.bf16 %v528_v39  ;;  %v525_v44 = vunpack.i.h.bf16 %v523_v40  ;;  %v524_v45 = vunpack.i.l.bf16 %v523_v40 }
  0xa2   : > { %279 = vmatpush.bf16.msra.mxu0 %v261_v38 }
  0xa3   : > { %v181_v46 = vsel %vm180_vm6, %v524_v45, %v525_v44  ;;  %v192_v47 = vsel %vm191_vm7, %v529_v43, %v530_v42 }
  0xa4   : > { %v259_v49 = vpack.c.bf16 %v192_v47, %v181_v46 }
  0xa6   : > { %280 = vmatpush.bf16.msra.mxu0 %v260_v48 }
  0xaa   : > { %281 = vmatpush.bf16.msra.mxu0 %v259_v49 }
  0xad   : > { %420 = vmatmul.msk.bf16.vlgmr.msra.gmra.mxu0 %vm270_vm8, %v426_v50 }
 0x12a   : > { %v283_v51 = vpop.f32.mrf.mxu0 }
 0x12b   : > { %288 = vst [vmem:[%s154_s28] sm:$0xff] %v283_v51 }
 0x12f   : > { %296 = sbr.rel (!%p656_p5) target bundleno = 316 (0x13c), region = 32 }
 0x132   : > { %v285_v52 = vpop.f32.mrf.mxu0  ;;  %v331_v53 = vld [vmem:[%s154_s28] sm:$0xff] (%p656_p5) }
 0x133   : > { %289 = vst [vmem:[%s154_s28 + $0x8] sm:$0xff] %v285_v52 }
 0x134   : > { %332 = vst [vmem:[%s300_s9] sm:$0xff] %v331_v53 }
 0x13a   : > { %v333_v54 = vld [vmem:[%s154_s28 + $0x8] sm:$0xff] }
 0x13b   : > { %334 = vst [vmem:[%s300_s9 + $0x10] sm:$0xff] %v333_v54 }
 0x13c PF: > { %s12_s15 = sadd.s32 1, %s585_s15   ;;  %s713_s9 = smov %s565_s10 }
 0x13d   : > { %p9_p11 = scmp.ge.s32.totalorder %s12_s15, 6   ;;  %s714_s10 = smov %s667_s24 }
 0x13e   : > { %s715_s11 = smov %s577_s13  ;;  %s716_s12 = smov %s581_s14 }
 0x13f   : > { %s717_s13 = smov %s720_s16  ;;  %s718_s14 = smov %s724_s17 }
 0x140   :  { %11 = sbr.rel (!%p9_p11) target bundleno = 4 (0x4), region = 96 }

// kernel: _lambda_.3
= control target key start
LH: loop header
LB: loop body
LE: loop exit
PB: predicated region body
PF: predicated region fallthrough
CT: control target
= control target key end

     0   :  { %s743_s9 = smov 0   ;;  %s745_s10 = smov 0   ;;  %s858_s0 = inlined_call_operand.vmem [shape: bf16[2,16,256], index: 0, kind: input, shape index: {}]   ;;  %s859_s1 = inlined_call_operand.vmem [shape: bf16[64,16], index: 1, kind: input, shape index: {}]   ;;  %s860_s2 = inlined_call_operand.vmem [shape: f32[2,2,1,256], index: 2, kind: output, shape index: {}]  }
   0x1   :  { %s747_s11 = smov 0   ;;  %s749_s12 = smov 0  }
   0x2   :  { %s751_s13 = smov 0   ;;  %s753_s14 = smov 0  }
   0x3   :  { %s755_s15 = smov 0  }
   0x4 LB: > { %s21_s16 = sadd.s32 1, %s709_s13  ;;  %s24_s17 = sadd.s32 1, %s713_s14  ;;  %s717_s15 = sphi %s755_s15, %s12_s15   ;;  %s713_s14 = sphi %s753_s14, %s866_s14   ;;  %s709_s13 = sphi %s751_s13, %s865_s13   ;;  %s705_s12 = sphi %s749_s12, %s864_s12   ;;  %s701_s11 = sphi %s747_s11, %s863_s11   ;;  %s697_s10 = sphi %s745_s10, %s862_s10   ;;  %s693_s9 = sphi %s743_s9, %s861_s9  }
   0x5   : > { %p22_p0 = scmp.ge.s32.totalorder %s21_s16, 2  ;;  %p40_p1 = scmp.ne.s32.totalorder %s697_s10, %s693_s9 }
   0x6   : > { %p41_p2 = scmp.eq.s32.totalorder %s717_s15, 0  ;;  %s33_s21 = sadd.s32 1, %s697_s10 }
   0x7   : > { %s868_s16 = smov (%p22_p0, %s21_s16), 0  ;;  %s870_s17 = smov (!%p22_p0, %s24_s17), %s713_s14 }
   0x8   : > { %p42_p3 = por %p41_p2, %p40_p1  ;;  %p26_p4 = scmp.ge.s32.totalorder %s870_s17, 2 }
   0x9   : > { %s29_s18 = ssub.s32 %s709_s13, %s868_s16  ;;  %p555_p6 = scmp.ge.s32.totalorder %s717_s15, 4 }
   0xa   : > { %s872_s17 = smov (%p26_p4, %s870_s17), 0 }
   0xb   : > { %s28_s19 = ssub.s32 %s713_s14, %s872_s17  ;;  %118 = sbr.rel (%p555_p6) target bundleno = 24 (0x18), region = 20 }
   0xc   : > { %s30_s20 = sor.u32 %s29_s18, %s28_s19 }
   0xd   : > { %p31_p5 = scmp.eq.s32.totalorder %s30_s20, 0 }
   0xf   : > { %s794_s22 = scalar_select %p31_p5, %s697_s10, %s33_s21  }
  0x10   : > { %121 = sbr.rel (!%p42_p3) target bundleno = 24 (0x18), region = 24  ;;  %s123_s23 = sand.u32 (%p42_p3), 1, %s697_s10  }
  0x11   : > { %s557_s24 = sshll.u32 (%p42_p3), %s713_s14, 2  ;;  %s556_s25 = sshll.u32 (%p42_p3), %s123_s23, 3 }
  0x12   : > { %s127_s26 = sadd.s32 (%p42_p3), %s709_s13, %s557_s24  ;;  %s125_s3 = scalar_lea.vmem (%p42_p3), [#allocation3], %s556_s25 }
  0x13   : > { %s558_s27 = sshll.u32 (%p42_p3), %s127_s26, 2 }
  0x14   : > { %s129_s30 = scalar_lea.vmem (%p42_p3), %s858_s0, %s558_s27 }
  0x15   : > { %v146_v0 = vld [vmem:[%s129_s30] sm:$0xf]  ;;  %v148_v1 = vld [vmem:[%s129_s30 + $0x8] sm:$0xf] }
  0x16   : > { %147 = vst [vmem:[%s125_s3] sm:$0xf] %v146_v0 }
  0x17   : > { %149 = vst [vmem:[%s125_s3 + $0x4] sm:$0xf] %v148_v1 }
  0x18 PF: > { %p559_p7 = scmp.ge.s32.totalorder %s717_s15, 1  ;;  %p176_p8 = scmp.lt.s32.totalorder %s717_s15, 5 }
  0x1a   : > { %p177_p9 = pnand %p559_p7, %p176_p8 }
  0x1b   : > { %s183_s4 = sand.u32 (!%p177_p9), 1, %s693_s9   ;;  %p207_p10 = scmp.lt.s32.totalorder (!%p177_p9), %s705_s12, 1 }
  0x1c   : > { %180 = sbr.rel (%p177_p9) target bundleno = 340 (0x154), region = 65  ;;  %s560_s5 = sshll.u32 (!%p177_p9), %s183_s4, 3 }
  0x1d   : > { %p209_p11 = scmp.lt.s32.totalorder (!%p177_p9), %s701_s11, 1  ;;  %s185_s23 = scalar_lea.vmem (!%p177_p9), [#allocation3], %s560_s5 }
  0x1e   : > { %p563_p12 = scmp.ne.s32.totalorder (!%p177_p9), %s701_s11, 0 }
  0x21   : > { %s874_s12 = smov (!%p207_p10, %s705_s12), 1 }
  0x22   : > { %s210_s6 = scalar_select %p209_p11, %s701_s11, 1 }
  0x23   : > { %s562_s7 = sshll.u32 %s874_s12, 2  ;;  %219 = sbr.rel (%p563_p12) target bundleno = 49 (0x31), region = 73 }
  0x24   : > { %s561_s8 = sshll.u32 %s210_s6, 1 }
  0x25   : > { %s810_s18 = sadd.s32 %s562_s7, %s561_s8 }
  0x26   : > { %s214_s21 = scalar_lea.vmem %s860_s2, %s810_s18 }
  0x28   : > { %v719_v2 = vmov 0.0  }
  0x29   : > { %220 = vst [vmem:[#allocation2 + $0x68] sm:$0xff] %v719_v2 }
  0x2a   : > { %221 = vst [vmem:[#allocation2 + $0x8] sm:$0xff] %v719_v2 }
  0x2b   : > { %222 = vst [vmem:[#allocation2 + $0x30] sm:$0xff] %v719_v2 }
  0x2c   : > { %223 = vst [vmem:[#allocation2 + $0x38] sm:$0xff] %v719_v2 }
  0x2d   : > { %224 = vst [vmem:[#allocation2 + $0x20] sm:$0xff] %v719_v2 }
  0x2e   : > { %225 = vst [vmem:[#allocation2 + $0x50] sm:$0xff] %v719_v2 }
  0x2f   : > { %226 = vst [vmem:[#allocation2 + $0x18] sm:$0xff] %v719_v2 }
  0x30   : > { %227 = vst [vmem:[#allocation2 + $0x10] sm:$0xff] %v719_v2 }
  0x31 PF: > { %v594_v3 = vld [vmem:[%s185_s23] sm:$0xff]  ;;  %vm264_vm0 = vcmask 130048   ;;  %v592_v7 = vld [vmem:[%s859_s1 + $0x10] sm:$0xff]  ;;  %v593_v8 = vld [vmem:[%s859_s1 + $0x18] sm:$0xff]  ;;  %s720_s29 = smov 256   ;;  %s721_s30 = smov 272   ;;  %v336_v29 = vlaneseq }
  0x32   : > { %v590_v4 = vld [vmem:[%s859_s1] sm:$0xff]  ;;  %v591_v5 = vld [vmem:[%s859_s1 + $0x8] sm:$0xff]  ;;  %284 = vmatpush.bf16.msra.mxu0 %v594_v3  ;;  %595 = vmatpush.bf16.msra.mxu1 %v594_v3  ;;  %v319_v9 = vld [vmem:[#allocation2 + $0x30] sm:$0xff]  ;;  %s722_s3 = smov 288   ;;  %s723_s4 = smov 296   ;;  %vm456_vm9 = vcmask 1040384  }
  0x33   : > { %v315_v6 = vld [vmem:[#allocation2 + $0x68] sm:$0xff]  ;;  %596 = vmatpush.bf16.msra.mxu2 %v594_v3  ;;  %597 = vmatpush.bf16.msra.mxu3 %v594_v3  ;;  %s724_s5 = smov 264   ;;  %v321_v13 = vld [vmem:[#allocation2 + $0x38] sm:$0xff]  ;;  %s725_s6 = smov 280   ;;  %v337_v32 = vshrl.u32 %v336_v29, 7  ;;  %v339_v34 = vand.u32 127, %v336_v29 }
  0x34   : > { %334 = vrot.lane.b32.xlu0 %v315_v6, %s720_s29  ;;  %361 = vrot.lane.b32.xlu2 %v319_v9, %s721_s30  ;;  %v323_v10 = vld [vmem:[#allocation2 + $0x20] sm:$0xff]  ;;  %v317_v12 = vld [vmem:[#allocation2 + $0x8] sm:$0xff]  ;;  %s726_s7 = smov 304   ;;  %s727_s8 = smov 312   ;;  %vm461_vm10 = vcmp.lt.s32.totalorder %v336_v29, 256 }
  0x35   : > { %584 = vmatmul.msk.bf16.vlgmr.msra.gmra.mxu0 %vm264_vm0, %v590_v4  ;;  %585 = vmatmul.msk.bf16.vlgmr.msra.gmra.mxu1 %vm264_vm0, %v591_v5  ;;  %v325_v11 = vld [vmem:[#allocation2 + $0x50] sm:$0xff]  ;;  %v351_v33 = vadd.s32 8, %v337_v32  ;;  %v363_v36 = vadd.s32 16, %v337_v32  ;;  %vm340_vm2 = vcmp.lt.s32.totalorder %v339_v34, %v337_v32  ;;  %v375_v41 = vadd.s32 24, %v337_v32 }
  0x36   : > { %586 = vmatmul.msk.bf16.vlgmr.msra.gmra.mxu2 %vm264_vm0, %v592_v7  ;;  %587 = vmatmul.msk.bf16.vlgmr.msra.gmra.mxu3 %vm264_vm0, %v593_v8  ;;  %v327_v23 = vld [vmem:[#allocation2 + $0x18] sm:$0xff]  ;;  %v387_v46 = vadd.s32 32, %v337_v32  ;;  %v399_v55 = vadd.s32 40, %v337_v32  ;;  %v411_v59 = vadd.s32 48, %v337_v32  ;;  %v423_v0 = vadd.s32 56, %v337_v32 }
  0x37   : > { %349 = vrot.lane.b32.xlu1 %v317_v12, %s724_s5  ;;  %v329_v22 = vld [vmem:[#allocation2 + $0x10] sm:$0xff]  ;;  %vm352_vm1 = vcmp.lt.s32.totalorder %v339_v34, %v351_v33  ;;  %vm364_vm3 = vcmp.lt.s32.totalorder %v339_v34, %v363_v36  ;;  %vm376_vm4 = vcmp.lt.s32.totalorder %v339_v34, %v375_v41 }
  0x38   : > { %vm388_vm5 = vcmp.lt.s32.totalorder %v339_v34, %v387_v46  ;;  %vm400_vm6 = vcmp.lt.s32.totalorder %v339_v34, %v399_v55  ;;  %vm412_vm7 = vcmp.lt.s32.totalorder %v339_v34, %v411_v59  ;;  %vm424_vm8 = vcmp.lt.s32.totalorder %v339_v34, %v423_v0 }
  0x3c   : > { %385 = vrot.lane.b32.xlu0 %v323_v10, %s722_s3  ;;  %397 = vrot.lane.b32.xlu2 %v325_v11, %s723_s4 }
  0x3f   : > { %373 = vrot.lane.b32.xlu1 %v321_v13, %s725_s6 }
  0x8e   : > { %v362_v25 = vpop.permute.xlu2 %361 }
  0x96   : > { %v398_v28 = vpop.permute.xlu2 %397 }
  0xa6   : > { %v335_v24 = vpop.permute.xlu0 %334 }
  0xa9   : > { %v350_v26 = vpop.permute.xlu1 %349 }
  0xae   : > { %v386_v27 = vpop.permute.xlu0 %385 }
  0xb1   : > { %v374_v30 = vpop.permute.xlu1 %373 }
  0xb2   : > { %v286_v14 = vpop.f32.mrf.mxu0  ;;  %v291_v15 = vpop.f32.mrf.mxu1 }
  0xb3   : > { %357 = vrot.lane.b32.xlu2 %v291_v15, %s721_s30  ;;  %331 = vrot.lane.b32.xlu0 %v286_v14, %s720_s29 }
  0xb9   : > { %v296_v16 = vpop.f32.mrf.mxu2  ;;  %v301_v17 = vpop.f32.mrf.mxu3 }
  0xba   : > { %v288_v18 = vpop.f32.mrf.mxu0  ;;  %v293_v19 = vpop.f32.mrf.mxu1 }
  0xbb   : > { %381 = vrot.lane.b32.xlu2 %v296_v16, %s722_s3  ;;  %405 = vrot.lane.b32.xlu0 %v301_v17, %s726_s7 }
  0xbc   : > { %345 = vrot.lane.b32.xlu1 %v288_v18, %s724_s5 }
  0xc1   : > { %v298_v20 = vpop.f32.mrf.mxu2  ;;  %v303_v21 = vpop.f32.mrf.mxu3 }
  0xc3   : > { %417 = vrot.lane.b32.xlu2 %v303_v21, %s727_s8  ;;  %369 = vrot.lane.b32.xlu0 %v293_v19, %s725_s6 }
  0xc4   : > { %393 = vrot.lane.b32.xlu1 %v298_v20, %s723_s4 }
  0xcb   : > { %421 = vrot.lane.b32.xlu0 %v329_v22, %s727_s8 }
  0xcc   : > { %409 = vrot.lane.b32.xlu1 %v327_v23, %s726_s7 }
 0x10d   : > { %v358_v35 = vpop.permute.xlu2 %357 }
 0x10e   : > { %v365_v47 = vsel %vm364_vm3, %v358_v35, %v362_v25  ;;  %v366_v48 = vsel %vm364_vm3, %v362_v25, %v358_v35 }
 0x115   : > { %v382_v52 = vpop.permute.xlu2 %381 }
 0x116   : > { %v389_v60 = vsel %vm388_vm5, %v382_v52, %v386_v27  ;;  %v390_v61 = vsel %vm388_vm5, %v386_v27, %v382_v52 }
 0x11d   : > { %v418_v9 = vpop.permute.xlu2 %417 }
 0x125   : > { %v332_v31 = vpop.permute.xlu0 %331 }
 0x126   : > { %v341_v42 = vsel %vm340_vm2, %v332_v31, %v335_v24  ;;  %v342_v43 = vsel %vm340_vm2, %v335_v24, %v332_v31 }
 0x12d   : > { %v406_v37 = vpop.permute.xlu0 %405 }
 0x12e   : > { %v346_v38 = vpop.permute.xlu1 %345 }
 0x12f   : > { %v353_v39 = vsel %vm352_vm1, %v346_v38, %v350_v26  ;;  %v354_v40 = vsel %vm352_vm1, %v350_v26, %v346_v38 }
 0x130   : > { %v427_v44 = vadd.f32 %v354_v40, %v342_v43  ;;  %v440_v45 = vadd.f32 %v353_v39, %v341_v42 }
 0x132   : > { %v428_v50 = vadd.f32 %v427_v44, %v366_v48  ;;  %v441_v51 = vadd.f32 %v440_v45, %v365_v47 }
 0x135   : > { %v370_v49 = vpop.permute.xlu0 %369 }
 0x136   : > { %v377_v53 = vsel %vm376_vm4, %v370_v49, %v374_v30  ;;  %v378_v54 = vsel %vm376_vm4, %v374_v30, %v370_v49  ;;  %v394_v56 = vpop.permute.xlu1 %393 }
 0x137   : > { %v429_v57 = vadd.f32 %v428_v50, %v378_v54  ;;  %v442_v58 = vadd.f32 %v441_v51, %v377_v53  ;;  %v401_v1 = vsel %vm400_vm6, %v394_v56, %v398_v28  ;;  %v402_v2 = vsel %vm400_vm6, %v398_v28, %v394_v56 }
 0x139   : > { %v430_v62 = vadd.f32 %v429_v57, %v390_v61  ;;  %v443_v63 = vadd.f32 %v442_v58, %v389_v60 }
 0x13b   : > { %v431_v3 = vadd.f32 %v430_v62, %v402_v2  ;;  %v444_v4 = vadd.f32 %v443_v63, %v401_v1 }
 0x13d   : > { %v422_v5 = vpop.permute.xlu0 %421 }
 0x13e   : > { %v410_v6 = vpop.permute.xlu1 %409  ;;  %v425_v12 = vsel %vm424_vm8, %v418_v9, %v422_v5  ;;  %v426_v13 = vsel %vm424_vm8, %v422_v5, %v418_v9 }
 0x13f   : > { %v413_v7 = vsel %vm412_vm7, %v406_v37, %v410_v6  ;;  %v414_v8 = vsel %vm412_vm7, %v410_v6, %v406_v37 }
 0x140   : > { %v432_v10 = vadd.f32 %v431_v3, %v414_v8  ;;  %v445_v11 = vadd.f32 %v444_v4, %v413_v7 }
 0x142   : > { %v433_v14 = vadd.f32 %v432_v10, %v426_v13  ;;  %v446_v15 = vadd.f32 %v445_v11, %v425_v12 }
 0x144   : > { %v434_v16 = vrot.slane %v433_v14, 4  ;;  %v447_v17 = vrot.slane %v446_v15, 4 }
 0x146   : > { %v435_v18 = vadd.f32 %v434_v16, %v433_v14  ;;  %v448_v19 = vadd.f32 %v447_v17, %v446_v15 }
 0x148   : > { %v436_v20 = vrot.slane %v435_v18, 2  ;;  %v449_v21 = vrot.slane %v448_v19, 2 }
 0x14a   : > { %v437_v22 = vadd.f32 %v436_v20, %v435_v18  ;;  %v450_v23 = vadd.f32 %v449_v21, %v448_v19 }
 0x14c   : > { %v438_v24 = vrot.slane %v437_v22, 1  ;;  %v451_v25 = vrot.slane %v450_v23, 1 }
 0x14e   : > { %v452_v26 = vadd.f32 %v451_v25, %v450_v23  ;;  %v439_v27 = vadd.f32 %v438_v24, %v437_v22 }
 0x150   : > { %v455_v28 = vrot.slane %v452_v26, 7 }
 0x152   : > { %v457_v30 = vsel %vm456_vm9, %v439_v27, %v455_v28 }
 0x153   : > { %463 = vst.msk [vmem:[%s214_s21] sm:$0x3] %vm461_vm10, %v457_v30 }
 0x154 PF: > { %s12_s15 = sadd.s32 1, %s717_s15   ;;  %s861_s9 = smov %s697_s10 }
 0x155   : > { %p9_p13 = scmp.ge.s32.totalorder %s12_s15, 6   ;;  %s862_s10 = smov %s794_s22 }
 0x156   : > { %s863_s11 = smov %s709_s13  ;;  %s864_s12 = smov %s713_s14 }
 0x157   : > { %s865_s13 = smov %s868_s16  ;;  %s866_s14 = smov %s872_s17 }
 0x158   :  { %11 = sbr.rel (!%p9_p13) target bundleno = 4 (0x4), region = 108 }

</bundles_post_ra>
